<compile_context>
chip_gen: v6e
topology: v6e:2x2x1
jax: 0.10.0
libtpu: 0.0.40
codegen_flags: <defaults>
</compile_context>

<pallas_src>
import functools
import numpy as np
import jax
import jax.numpy as jnp
from jax.experimental import pallas as pl
from jax.experimental.pallas import tpu as pltpu


# ----------------------------------------------------------------------------
# Host-side (plain numpy) setup mirroring BaseCost.__init__ / get_origin_points.
# ----------------------------------------------------------------------------
def gen_dx_bx(xbound, ybound, zbound):
    dx = np.array([row[2] for row in [xbound, ybound, zbound]], dtype=np.float32)
    bx = np.array([row[0] + row[2] / 2.0 for row in [xbound, ybound, zbound]],
                  dtype=np.float32)
    nx = np.array([(row[1] - row[0]) / row[2] for row in [xbound, ybound, zbound]],
                  dtype=np.int64)
    return dx, bx, nx


def calculate_birds_eye_view_parameters(x_bounds, y_bounds, z_bounds):
    bev_resolution = np.array([row[2] for row in [x_bounds, y_bounds, z_bounds]],
                              dtype=np.float32)
    bev_start_position = np.array(
        [row[0] + row[2] / 2.0 for row in [x_bounds, y_bounds, z_bounds]],
        dtype=np.float32)
    bev_dimension = np.array(
        [(row[1] - row[0]) / row[2] for row in [x_bounds, y_bounds, z_bounds]],
        dtype=np.int64)
    return bev_resolution, bev_start_position, bev_dimension


def _polygon(r, c):
    """Minimal numpy reimplementation of skimage.draw.polygon (even-odd rule).

    Exact for the axis-aligned, non-integer-boundary ego footprint used here.
    """
    r = np.asarray(r, np.float64)
    c = np.asarray(c, np.float64)
    minr, maxr = int(max(0, np.floor(r.min()))), int(np.ceil(r.max()))
    minc, maxc = int(max(0, np.floor(c.min()))), int(np.ceil(c.max()))
    rg, cg = np.meshgrid(np.arange(minr, maxr + 1), np.arange(minc, maxc + 1),
                         indexing="ij")
    pr = rg.ravel().astype(np.float64)
    pc = cg.ravel().astype(np.float64)
    inside = np.zeros(pr.shape, dtype=bool)
    nv = len(r)
    j = nv - 1
    for i in range(nv):
        denom = r[j] - r[i]
        if denom != 0.0:
            crosses = (r[i] > pr) != (r[j] > pr)
            xint = (c[j] - c[i]) * (pr - r[i]) / denom + c[i]
            inside ^= crosses & (pc < xint)
        j = i
    return (rg.ravel()[inside].astype(np.int64),
            cg.ravel()[inside].astype(np.int64))


def _batch_tiling(B, max_unroll=8):
    """Collapse the grid: as few steps as possible (one when B <= max_unroll).

    Per-step overhead (~0.35 us) dwarfs per-batch-element DMA (~80 KB of int8
    maps) and compute at this problem size, so fewer steps is a near-linear
    latency win on the single-TC v5e/v6e.  `max_unroll` caps the static per-b
    unroll inside the kernel (vreg live-range / VMEM growth).
    Returns (num_steps, bt, b_pad) with b_pad = num_steps * bt >= B.
    """
    num_steps = max(1, -(-B // max_unroll))
    bt = -(-B // num_steps)
    return num_steps, bt, num_steps * bt


# ----------------------------------------------------------------------------
# Pallas kernel: bt batch elements per grid step (usually the whole batch).
# ----------------------------------------------------------------------------
def _headway_kernel(trajs_ref, occ_ref, driv_ref, out_ref, *,
                    dx0, dx1, shift_l, bev_h, bev_w, row_offs, col_offs,
                    factor, bt):
    n = trajs_ref.shape[1]
    w_pad = occ_ref.shape[2]            # lane-padded map width (e.g. 256)
    n_out = out_ref.shape[2]            # lane-padded output width (>= 128)

    # Hoisted iotas (shared across all bt batch elements).
    iota_h = jax.lax.broadcasted_iota(jnp.int32, (n, bev_h), 1)
    iota_w = jax.lax.broadcasted_iota(jnp.int32, (n, w_pad), 1)

    # TODO(synk): if bt is ever raised past ~8, switch this static unroll to a
    # lax.fori_loop body to bound live ranges of the per-b full-tile intermediates.
    for b in range(bt):                                    # static unroll, bt <= 8
        # Maps arrive in their compact transport dtype (int8 masks in the demo);
        # fused cast chain: one cast per map + one bf16 multiply (0/1 exact in bf16).
        mask_bf = (occ_ref[b].astype(jnp.bfloat16) *
                   driv_ref[b].astype(jnp.bfloat16))       # (H, Wp)

        tr = trajs_ref[b]                                  # (N, 2) f32
        # Divide once (matches reference op order), then add integer footprint
        # offsets in float and truncate — bit-identical to the PyTorch .long() path.
        xr = tr[:, 0:1] / dx0                              # (N, 1) row coordinate
        yc = (tr[:, 1:2] + shift_l) / dx1                  # (N, 1) col coord + L

        # Multi-hot (count) row / col vectors of the rectangular ego footprint.
        # sum_p occ[rr[n,p], cc[n,p]] == U[n] @ occ @ V[n]; clamping keeps multiplicity.
        u = jnp.zeros((n, bev_h), jnp.float32)
        for off in row_offs:                               # static unroll (~4 offsets)
            ri = jnp.clip((xr + off).astype(jnp.int32), 0, bev_h - 1)
            u = u + (iota_h == ri).astype(jnp.float32)
        v = jnp.zeros((n, w_pad), jnp.float32)
        for off in col_offs:                               # static unroll (~8 offsets)
            ci = jnp.clip((yc + off).astype(jnp.int32), 0, bev_w - 1)
            v = v + (iota_w == ci).astype(jnp.float32)

        # (N, H) @ (H, Wp) on the MXU, bf16 operands (exact: small-int counts /
        # 0-1 mask), f32 accumulation.  Padded map columns are zero -> no effect.
        t = jnp.dot(u.astype(jnp.bfloat16), mask_bf,
                    preferred_element_type=jnp.float32)    # (N, Wp)
        sub = (jnp.sum(t * v, axis=-1) * factor).reshape(1, n)   # (1, N)
        if n_out > n:                                      # lane-dense output row
            sub = jnp.concatenate(
                [sub, jnp.zeros((1, n_out - n), jnp.float32)], axis=1)
        out_ref[b] = sub                                   # (1, n_out) store


class HeadwayCostPallas:
    """JAX/Pallas port of HeadwayCost.forward (BaseCost.compute_area hot path)."""

    def __init__(self, grid_conf):
        dx, bx, _ = gen_dx_bx(grid_conf["xbound"], grid_conf["ybound"],
                              grid_conf["zbound"])
        self.dx, self.bx = dx[:2], bx[:2]
        _, _, self.bev_dimension = calculate_birds_eye_view_parameters(
            grid_conf["xbound"], grid_conf["ybound"], grid_conf["zbound"])
        self.W, self.H = 1.85, 4.084
        self.L, self.factor = 10, 1.0

        self.rc = self._get_origin_points(0)                     # (P, 2) int64
        rows = np.unique(self.rc[:, 0])
        cols = np.unique(self.rc[:, 1])
        assert (self.rc.shape[0] == rows.size * cols.size and
                set(map(tuple, self.rc.tolist())) ==
                {(int(a), int(b)) for a in rows for b in cols}), \
            "ego footprint is not a full rectangle"
        # TODO(synk): if the footprint were not a full row x col cross product
        # (non-axis-aligned polygon), a general per-point gather path would be needed.
        self.row_offs = tuple(float(val) for val in rows)
        self.col_offs = tuple(float(val) for val in cols)

    def _get_origin_points(self, lambda_=0):
        W, H = self.W, self.H
        pts = np.array([[-H / 2.0 + 0.5 - lambda_,  W / 2.0 + lambda_],
                        [ H / 2.0 + 0.5 + lambda_,  W / 2.0 + lambda_],
                        [ H / 2.0 + 0.5 + lambda_, -W / 2.0 - lambda_],
                        [-H / 2.0 + 0.5 - lambda_, -W / 2.0 - lambda_]])
        pts = (pts - self.bx.astype(np.float64)) / self.dx.astype(np.float64)
        rr, cc = _polygon(pts[:, 1], pts[:, 0])
        return np.concatenate([rr[:, None], cc[:, None]], axis=-1)

    def __call__(self, trajs, instance_occupancy, drivable_area):
        """Maps are passed in their native dtype (ideally int8 binary masks) and
        cast inside the kernel — no host-side up-cast to f32."""
        B, N, _ = trajs.shape
        bev_h, bev_w = int(self.bev_dimension[0]), int(self.bev_dimension[1])

        num_steps, bt, b_pad = _batch_tiling(B)
        w_pad = max(128, -(-bev_w // 128) * 128)          # lane-dense map width
        n_out = max(128, -(-N // 128) * 128)              # lane-dense output width

        # Pad once outside the kernel: batch (non-divisor B) and map lane dim.
        trajs_p = trajs.astype(jnp.float32)
        occ_p, driv_p = instance_occupancy, drivable_area
        if b_pad > B:
            trajs_p = jnp.pad(trajs_p, ((0, b_pad - B), (0, 0), (0, 0)))
        if b_pad > B or w_pad > bev_w:
            pads = ((0, b_pad - B), (0, 0), (0, w_pad - bev_w))
            occ_p = jnp.pad(occ_p, pads)
            driv_p = jnp.pad(driv_p, pads)

        kernel = functools.partial(
            _headway_kernel,
            dx0=float(self.dx[0]), dx1=float(self.dx[1]), shift_l=float(self.L),
            bev_h=bev_h, bev_w=bev_w,
            row_offs=self.row_offs, col_offs=self.col_offs,
            factor=float(self.factor), bt=bt)

        # TODO(synk): if N grows to hundreds, pad N to a multiple of 128/256 and
        # fold the per-b dots into one batched einsum so the MXU M-dim fills.
        out = pl.pallas_call(
            kernel,
            out_shape=jax.ShapeDtypeStruct((b_pad, 1, n_out), jnp.float32),
            grid=(num_steps,),
            in_specs=[
                pl.BlockSpec((bt, N, 2), lambda g: (g, 0, 0)),
                pl.BlockSpec((bt, bev_h, w_pad), lambda g: (g, 0, 0)),
                pl.BlockSpec((bt, bev_h, w_pad), lambda g: (g, 0, 0)),
            ],
            out_specs=pl.BlockSpec((bt, 1, n_out), lambda g: (g, 0, 0)),
            compiler_params=pltpu.CompilerParams(
                dimension_semantics=("parallel",)),
        )(trajs_p, occ_p, driv_p)
        return out[:B, 0, :N]                                     # (B, N)

    # Pure-JAX reference (direct gather), used only for verification.
    def reference(self, trajs, instance_occupancy, drivable_area):
        occ_ = (instance_occupancy.astype(jnp.float32) *
                drivable_area.astype(jnp.float32))
        tmp = trajs.astype(jnp.float32).at[:, :, 1].add(float(self.L))
        rc = jnp.asarray(self.rc, jnp.float32)                    # (P, 2)
        dx = jnp.asarray(self.dx, jnp.float32)                    # (2,)
        t = tmp[:, :, None, :] / dx + rc                          # (B, N, P, 2)
        rr = jnp.clip(t[..., 0].astype(jnp.int32), 0, int(self.bev_dimension[0]) - 1)
        cc = jnp.clip(t[..., 1].astype(jnp.int32), 0, int(self.bev_dimension[1]) - 1)
        ii = jnp.arange(trajs.shape[0])[:, None, None]
        sub = occ_[ii, rr, cc].sum(axis=-1)
        return sub * self.factor


if __name__ == "__main__":
    grid_conf = {"xbound": [-50.0, 50.0, 0.5],
                 "ybound": [-50.0, 50.0, 0.5],
                 "zbound": [-10.0, 10.0, 20.0]}      # -> 200 x 200 BEV grid
    cost = HeadwayCostPallas(grid_conf)

    B, N = 2, 8
    key = jax.random.PRNGKey(0)
    k1, k2, k3 = jax.random.split(key, 3)
    trajs = jax.random.uniform(k1, (B, N, 2), jnp.float32, minval=-20.0, maxval=20.0)
    # Binary occupancy / drivable masks shipped as int8 (4x less HBM traffic than f32).
    instance_occupancy = (jax.random.uniform(k2, (B, 200, 200)) > 0.5).astype(jnp.int8)
    drivable_area = (jax.random.uniform(k3, (B, 200, 200)) > 0.3).astype(jnp.int8)

    out = cost(trajs, instance_occupancy, drivable_area)
    out = jax.block_until_ready(out)

    ref = cost.reference(trajs, instance_occupancy, drivable_area)
    np.testing.assert_allclose(np.asarray(out), np.asarray(ref), rtol=1e-5, atol=1e-5)
    print("KERNEL_OK")
</pallas_src>

<mosaic_0001>
module attributes {stable_mosaic.version = 11 : i64} {
  func.func @_headway_kernel(%arg0: i32, %arg1: memref<2x8x2xf32, #tpu.memory_space<vmem>>, %arg2: memref<2x200x256xi8, #tpu.memory_space<vmem>>, %arg3: memref<2x200x256xi8, #tpu.memory_space<vmem>>, %arg4: memref<2x1x128xf32, #tpu.memory_space<vmem>>) attributes {dimension_semantics = [#tpu.dimension_semantics<parallel>], iteration_bounds = array<i64: 1>, scalar_prefetch = 0 : i64, scratch_operands = 0 : i64, tpu.core_type = #tpu.core_type<tc>, window_params = [{transform_indices = @transform_0, window_bounds = array<i64: 2, 8, 2>}, {transform_indices = @transform_1, window_bounds = array<i64: 2, 200, 256>}, {transform_indices = @transform_2, window_bounds = array<i64: 2, 200, 256>}, {transform_indices = @transform_3, window_bounds = array<i64: 2, 1, 128>}]} {
    %0 = tpu.iota {dimensions = array<i32: 1>} : vector<8x200xi32>
    %1 = tpu.iota {dimensions = array<i32: 1>} : vector<8x256xi32>
    %c0 = arith.constant 0 : index
    %c0_0 = arith.constant 0 : index
    %c0_1 = arith.constant 0 : index
    %2 = vector.load %arg2[%c0, %c0_0, %c0_1] : memref<2x200x256xi8, #tpu.memory_space<vmem>>, vector<1x200x256xi8>
    %3 = vector.shape_cast %2 : vector<1x200x256xi8> to vector<200x256xi8>
    %4 = arith.sitofp %3 : vector<200x256xi8> to vector<200x256xbf16>
    %c0_2 = arith.constant 0 : index
    %c0_3 = arith.constant 0 : index
    %c0_4 = arith.constant 0 : index
    %5 = vector.load %arg3[%c0_2, %c0_3, %c0_4] : memref<2x200x256xi8, #tpu.memory_space<vmem>>, vector<1x200x256xi8>
    %6 = vector.shape_cast %5 : vector<1x200x256xi8> to vector<200x256xi8>
    %7 = arith.sitofp %6 : vector<200x256xi8> to vector<200x256xbf16>
    %8 = arith.mulf %4, %7 : vector<200x256xbf16>
    %c0_5 = arith.constant 0 : index
    %c0_6 = arith.constant 0 : index
    %c0_7 = arith.constant 0 : index
    %9 = vector.load %arg1[%c0_5, %c0_6, %c0_7] : memref<2x8x2xf32, #tpu.memory_space<vmem>>, vector<1x8x2xf32>
    %10 = vector.shape_cast %9 : vector<1x8x2xf32> to vector<8x2xf32>
    %11 = vector.extract_strided_slice %10 {offsets = [0, 0], sizes = [8, 1], strides = [1, 1]} : vector<8x2xf32> to vector<8x1xf32>
    %cst = arith.constant 5.000000e-01 : f32
    %12 = vector.broadcast %cst : f32 to vector<8x1xf32>
    %13 = arith.divf %11, %12 : vector<8x1xf32>
    %14 = vector.extract_strided_slice %10 {offsets = [0, 1], sizes = [8, 1], strides = [1, 1]} : vector<8x2xf32> to vector<8x1xf32>
    %cst_8 = arith.constant 1.000000e+01 : f32
    %15 = vector.broadcast %cst_8 : f32 to vector<8x1xf32>
    %16 = arith.addf %14, %15 : vector<8x1xf32>
    %cst_9 = arith.constant 5.000000e-01 : f32
    %17 = vector.broadcast %cst_9 : f32 to vector<8x1xf32>
    %18 = arith.divf %16, %17 : vector<8x1xf32>
    %cst_10 = arith.constant 0.000000e+00 : f32
    %19 = vector.broadcast %cst_10 : f32 to vector<8x200xf32>
    %cst_11 = arith.constant 9.800000e+01 : f32
    %20 = vector.broadcast %cst_11 : f32 to vector<8x1xf32>
    %21 = arith.addf %13, %20 : vector<8x1xf32>
    %22 = arith.fptosi %21 : vector<8x1xf32> to vector<8x1xi32>
    %c0_i32 = arith.constant 0 : i32
    %c199_i32 = arith.constant 199 : i32
    %23 = vector.broadcast %c0_i32 : i32 to vector<8x1xi32>
    %24 = arith.maxsi %23, %22 : vector<8x1xi32>
    %25 = vector.broadcast %c199_i32 : i32 to vector<8x1xi32>
    %26 = arith.minsi %25, %24 : vector<8x1xi32>
    %27 = vector.broadcast %26 : vector<8x1xi32> to vector<8x200xi32>
    %28 = arith.cmpi eq, %0, %27 : vector<8x200xi32>
    %29 = arith.extui %28 : vector<8x200xi1> to vector<8x200xi32>
    %30 = arith.sitofp %29 : vector<8x200xi32> to vector<8x200xf32>
    %31 = arith.addf %19, %30 : vector<8x200xf32>
    %cst_12 = arith.constant 9.900000e+01 : f32
    %32 = vector.broadcast %cst_12 : f32 to vector<8x1xf32>
    %33 = arith.addf %13, %32 : vector<8x1xf32>
    %34 = arith.fptosi %33 : vector<8x1xf32> to vector<8x1xi32>
    %c0_i32_13 = arith.constant 0 : i32
    %c199_i32_14 = arith.constant 199 : i32
    %35 = vector.broadcast %c0_i32_13 : i32 to vector<8x1xi32>
    %36 = arith.maxsi %35, %34 : vector<8x1xi32>
    %37 = vector.broadcast %c199_i32_14 : i32 to vector<8x1xi32>
    %38 = arith.minsi %37, %36 : vector<8x1xi32>
    %39 = vector.broadcast %38 : vector<8x1xi32> to vector<8x200xi32>
    %40 = arith.cmpi eq, %0, %39 : vector<8x200xi32>
    %41 = arith.extui %40 : vector<8x200xi1> to vector<8x200xi32>
    %42 = arith.sitofp %41 : vector<8x200xi32> to vector<8x200xf32>
    %43 = arith.addf %31, %42 : vector<8x200xf32>
    %cst_15 = arith.constant 1.000000e+02 : f32
    %44 = vector.broadcast %cst_15 : f32 to vector<8x1xf32>
    %45 = arith.addf %13, %44 : vector<8x1xf32>
    %46 = arith.fptosi %45 : vector<8x1xf32> to vector<8x1xi32>
    %c0_i32_16 = arith.constant 0 : i32
    %c199_i32_17 = arith.constant 199 : i32
    %47 = vector.broadcast %c0_i32_16 : i32 to vector<8x1xi32>
    %48 = arith.maxsi %47, %46 : vector<8x1xi32>
    %49 = vector.broadcast %c199_i32_17 : i32 to vector<8x1xi32>
    %50 = arith.minsi %49, %48 : vector<8x1xi32>
    %51 = vector.broadcast %50 : vector<8x1xi32> to vector<8x200xi32>
    %52 = arith.cmpi eq, %0, %51 : vector<8x200xi32>
    %53 = arith.extui %52 : vector<8x200xi1> to vector<8x200xi32>
    %54 = arith.sitofp %53 : vector<8x200xi32> to vector<8x200xf32>
    %55 = arith.addf %43, %54 : vector<8x200xf32>
    %cst_18 = arith.constant 1.010000e+02 : f32
    %56 = vector.broadcast %cst_18 : f32 to vector<8x1xf32>
    %57 = arith.addf %13, %56 : vector<8x1xf32>
    %58 = arith.fptosi %57 : vector<8x1xf32> to vector<8x1xi32>
    %c0_i32_19 = arith.constant 0 : i32
    %c199_i32_20 = arith.constant 199 : i32
    %59 = vector.broadcast %c0_i32_19 : i32 to vector<8x1xi32>
    %60 = arith.maxsi %59, %58 : vector<8x1xi32>
    %61 = vector.broadcast %c199_i32_20 : i32 to vector<8x1xi32>
    %62 = arith.minsi %61, %60 : vector<8x1xi32>
    %63 = vector.broadcast %62 : vector<8x1xi32> to vector<8x200xi32>
    %64 = arith.cmpi eq, %0, %63 : vector<8x200xi32>
    %65 = arith.extui %64 : vector<8x200xi1> to vector<8x200xi32>
    %66 = arith.sitofp %65 : vector<8x200xi32> to vector<8x200xf32>
    %67 = arith.addf %55, %66 : vector<8x200xf32>
    %cst_21 = arith.constant 0.000000e+00 : f32
    %68 = vector.broadcast %cst_21 : f32 to vector<8x256xf32>
    %cst_22 = arith.constant 9.700000e+01 : f32
    %69 = vector.broadcast %cst_22 : f32 to vector<8x1xf32>
    %70 = arith.addf %18, %69 : vector<8x1xf32>
    %71 = arith.fptosi %70 : vector<8x1xf32> to vector<8x1xi32>
    %c0_i32_23 = arith.constant 0 : i32
    %c199_i32_24 = arith.constant 199 : i32
    %72 = vector.broadcast %c0_i32_23 : i32 to vector<8x1xi32>
    %73 = arith.maxsi %72, %71 : vector<8x1xi32>
    %74 = vector.broadcast %c199_i32_24 : i32 to vector<8x1xi32>
    %75 = arith.minsi %74, %73 : vector<8x1xi32>
    %76 = vector.broadcast %75 : vector<8x1xi32> to vector<8x256xi32>
    %77 = arith.cmpi eq, %1, %76 : vector<8x256xi32>
    %78 = arith.extui %77 : vector<8x256xi1> to vector<8x256xi32>
    %79 = arith.sitofp %78 : vector<8x256xi32> to vector<8x256xf32>
    %80 = arith.addf %68, %79 : vector<8x256xf32>
    %cst_25 = arith.constant 9.800000e+01 : f32
    %81 = vector.broadcast %cst_25 : f32 to vector<8x1xf32>
    %82 = arith.addf %18, %81 : vector<8x1xf32>
    %83 = arith.fptosi %82 : vector<8x1xf32> to vector<8x1xi32>
    %c0_i32_26 = arith.constant 0 : i32
    %c199_i32_27 = arith.constant 199 : i32
    %84 = vector.broadcast %c0_i32_26 : i32 to vector<8x1xi32>
    %85 = arith.maxsi %84, %83 : vector<8x1xi32>
    %86 = vector.broadcast %c199_i32_27 : i32 to vector<8x1xi32>
    %87 = arith.minsi %86, %85 : vector<8x1xi32>
    %88 = vector.broadcast %87 : vector<8x1xi32> to vector<8x256xi32>
    %89 = arith.cmpi eq, %1, %88 : vector<8x256xi32>
    %90 = arith.extui %89 : vector<8x256xi1> to vector<8x256xi32>
    %91 = arith.sitofp %90 : vector<8x256xi32> to vector<8x256xf32>
    %92 = arith.addf %80, %91 : vector<8x256xf32>
    %cst_28 = arith.constant 9.900000e+01 : f32
    %93 = vector.broadcast %cst_28 : f32 to vector<8x1xf32>
    %94 = arith.addf %18, %93 : vector<8x1xf32>
    %95 = arith.fptosi %94 : vector<8x1xf32> to vector<8x1xi32>
    %c0_i32_29 = arith.constant 0 : i32
    %c199_i32_30 = arith.constant 199 : i32
    %96 = vector.broadcast %c0_i32_29 : i32 to vector<8x1xi32>
    %97 = arith.maxsi %96, %95 : vector<8x1xi32>
    %98 = vector.broadcast %c199_i32_30 : i32 to vector<8x1xi32>
    %99 = arith.minsi %98, %97 : vector<8x1xi32>
    %100 = vector.broadcast %99 : vector<8x1xi32> to vector<8x256xi32>
    %101 = arith.cmpi eq, %1, %100 : vector<8x256xi32>
    %102 = arith.extui %101 : vector<8x256xi1> to vector<8x256xi32>
    %103 = arith.sitofp %102 : vector<8x256xi32> to vector<8x256xf32>
    %104 = arith.addf %92, %103 : vector<8x256xf32>
    %cst_31 = arith.constant 1.000000e+02 : f32
    %105 = vector.broadcast %cst_31 : f32 to vector<8x1xf32>
    %106 = arith.addf %18, %105 : vector<8x1xf32>
    %107 = arith.fptosi %106 : vector<8x1xf32> to vector<8x1xi32>
    %c0_i32_32 = arith.constant 0 : i32
    %c199_i32_33 = arith.constant 199 : i32
    %108 = vector.broadcast %c0_i32_32 : i32 to vector<8x1xi32>
    %109 = arith.maxsi %108, %107 : vector<8x1xi32>
    %110 = vector.broadcast %c199_i32_33 : i32 to vector<8x1xi32>
    %111 = arith.minsi %110, %109 : vector<8x1xi32>
    %112 = vector.broadcast %111 : vector<8x1xi32> to vector<8x256xi32>
    %113 = arith.cmpi eq, %1, %112 : vector<8x256xi32>
    %114 = arith.extui %113 : vector<8x256xi1> to vector<8x256xi32>
    %115 = arith.sitofp %114 : vector<8x256xi32> to vector<8x256xf32>
    %116 = arith.addf %104, %115 : vector<8x256xf32>
    %cst_34 = arith.constant 1.010000e+02 : f32
    %117 = vector.broadcast %cst_34 : f32 to vector<8x1xf32>
    %118 = arith.addf %18, %117 : vector<8x1xf32>
    %119 = arith.fptosi %118 : vector<8x1xf32> to vector<8x1xi32>
    %c0_i32_35 = arith.constant 0 : i32
    %c199_i32_36 = arith.constant 199 : i32
    %120 = vector.broadcast %c0_i32_35 : i32 to vector<8x1xi32>
    %121 = arith.maxsi %120, %119 : vector<8x1xi32>
    %122 = vector.broadcast %c199_i32_36 : i32 to vector<8x1xi32>
    %123 = arith.minsi %122, %121 : vector<8x1xi32>
    %124 = vector.broadcast %123 : vector<8x1xi32> to vector<8x256xi32>
    %125 = arith.cmpi eq, %1, %124 : vector<8x256xi32>
    %126 = arith.extui %125 : vector<8x256xi1> to vector<8x256xi32>
    %127 = arith.sitofp %126 : vector<8x256xi32> to vector<8x256xf32>
    %128 = arith.addf %116, %127 : vector<8x256xf32>
    %cst_37 = arith.constant 1.020000e+02 : f32
    %129 = vector.broadcast %cst_37 : f32 to vector<8x1xf32>
    %130 = arith.addf %18, %129 : vector<8x1xf32>
    %131 = arith.fptosi %130 : vector<8x1xf32> to vector<8x1xi32>
    %c0_i32_38 = arith.constant 0 : i32
    %c199_i32_39 = arith.constant 199 : i32
    %132 = vector.broadcast %c0_i32_38 : i32 to vector<8x1xi32>
    %133 = arith.maxsi %132, %131 : vector<8x1xi32>
    %134 = vector.broadcast %c199_i32_39 : i32 to vector<8x1xi32>
    %135 = arith.minsi %134, %133 : vector<8x1xi32>
    %136 = vector.broadcast %135 : vector<8x1xi32> to vector<8x256xi32>
    %137 = arith.cmpi eq, %1, %136 : vector<8x256xi32>
    %138 = arith.extui %137 : vector<8x256xi1> to vector<8x256xi32>
    %139 = arith.sitofp %138 : vector<8x256xi32> to vector<8x256xf32>
    %140 = arith.addf %128, %139 : vector<8x256xf32>
    %cst_40 = arith.constant 1.030000e+02 : f32
    %141 = vector.broadcast %cst_40 : f32 to vector<8x1xf32>
    %142 = arith.addf %18, %141 : vector<8x1xf32>
    %143 = arith.fptosi %142 : vector<8x1xf32> to vector<8x1xi32>
    %c0_i32_41 = arith.constant 0 : i32
    %c199_i32_42 = arith.constant 199 : i32
    %144 = vector.broadcast %c0_i32_41 : i32 to vector<8x1xi32>
    %145 = arith.maxsi %144, %143 : vector<8x1xi32>
    %146 = vector.broadcast %c199_i32_42 : i32 to vector<8x1xi32>
    %147 = arith.minsi %146, %145 : vector<8x1xi32>
    %148 = vector.broadcast %147 : vector<8x1xi32> to vector<8x256xi32>
    %149 = arith.cmpi eq, %1, %148 : vector<8x256xi32>
    %150 = arith.extui %149 : vector<8x256xi1> to vector<8x256xi32>
    %151 = arith.sitofp %150 : vector<8x256xi32> to vector<8x256xf32>
    %152 = arith.addf %140, %151 : vector<8x256xf32>
    %cst_43 = arith.constant 1.040000e+02 : f32
    %153 = vector.broadcast %cst_43 : f32 to vector<8x1xf32>
    %154 = arith.addf %18, %153 : vector<8x1xf32>
    %155 = arith.fptosi %154 : vector<8x1xf32> to vector<8x1xi32>
    %c0_i32_44 = arith.constant 0 : i32
    %c199_i32_45 = arith.constant 199 : i32
    %156 = vector.broadcast %c0_i32_44 : i32 to vector<8x1xi32>
    %157 = arith.maxsi %156, %155 : vector<8x1xi32>
    %158 = vector.broadcast %c199_i32_45 : i32 to vector<8x1xi32>
    %159 = arith.minsi %158, %157 : vector<8x1xi32>
    %160 = vector.broadcast %159 : vector<8x1xi32> to vector<8x256xi32>
    %161 = arith.cmpi eq, %1, %160 : vector<8x256xi32>
    %162 = arith.extui %161 : vector<8x256xi1> to vector<8x256xi32>
    %163 = arith.sitofp %162 : vector<8x256xi32> to vector<8x256xf32>
    %164 = arith.addf %152, %163 : vector<8x256xf32>
    %165 = arith.truncf %67 : vector<8x200xf32> to vector<8x200xbf16>
    %cst_46 = arith.constant dense<0.000000e+00> : vector<8x256xf32>
    %166 = tpu.matmul %165, %8, %cst_46 {dimension_numbers = #tpu.dot_dimension_numbers<[1], [0], [0], [1], [0, 0, 1, 1], [], []>} : vector<8x200xbf16>, vector<200x256xbf16>, vector<8x256xf32> -> vector<8x256xf32>
    %167 = arith.mulf %166, %164 : vector<8x256xf32>
    %cst_47 = arith.constant dense<0.000000e+00> : vector<8xf32>
    %168 = vector.multi_reduction <add>, %167, %cst_47 [1] : vector<8x256xf32> to vector<8xf32>
    %cst_48 = arith.constant 1.000000e+00 : f32
    %169 = vector.broadcast %cst_48 : f32 to vector<8xf32>
    %170 = arith.mulf %168, %169 : vector<8xf32>
    %171 = vector.shape_cast %170 : vector<8xf32> to vector<1x8xf32>
    %cst_49 = arith.constant 0.000000e+00 : f32
    %172 = vector.broadcast %cst_49 : f32 to vector<1x120xf32>
    %173 = tpu.concatenate %171, %172 in 1 : vector<1x8xf32>, vector<1x120xf32> -> vector<1x128xf32>
    %c0_50 = arith.constant 0 : index
    %c0_51 = arith.constant 0 : index
    %c0_52 = arith.constant 0 : index
    %174 = vector.load %arg4[%c0_50, %c0_51, %c0_52] : memref<2x1x128xf32, #tpu.memory_space<vmem>>, vector<1x1x128xf32>
    %175 = vector.shape_cast %174 : vector<1x1x128xf32> to vector<1x128xf32>
    %176 = vector.shape_cast %173 : vector<1x128xf32> to vector<1x1x128xf32>
    tpu.vector_store %arg4[%c0_50, %c0_51, %c0_52], %176 {strides = array<i32>} : memref<2x1x128xf32, #tpu.memory_space<vmem>>, vector<1x1x128xf32>,
    %c1 = arith.constant 1 : index
    %c0_53 = arith.constant 0 : index
    %c0_54 = arith.constant 0 : index
    %177 = vector.load %arg2[%c1, %c0_53, %c0_54] : memref<2x200x256xi8, #tpu.memory_space<vmem>>, vector<1x200x256xi8>
    %178 = vector.shape_cast %177 : vector<1x200x256xi8> to vector<200x256xi8>
    %179 = arith.sitofp %178 : vector<200x256xi8> to vector<200x256xbf16>
    %c1_55 = arith.constant 1 : index
    %c0_56 = arith.constant 0 : index
    %c0_57 = arith.constant 0 : index
    %180 = vector.load %arg3[%c1_55, %c0_56, %c0_57] : memref<2x200x256xi8, #tpu.memory_space<vmem>>, vector<1x200x256xi8>
    %181 = vector.shape_cast %180 : vector<1x200x256xi8> to vector<200x256xi8>
    %182 = arith.sitofp %181 : vector<200x256xi8> to vector<200x256xbf16>
    %183 = arith.mulf %179, %182 : vector<200x256xbf16>
    %c1_58 = arith.constant 1 : index
    %c0_59 = arith.constant 0 : index
    %c0_60 = arith.constant 0 : index
    %184 = vector.load %arg1[%c1_58, %c0_59, %c0_60] : memref<2x8x2xf32, #tpu.memory_space<vmem>>, vector<1x8x2xf32>
    %185 = vector.shape_cast %184 : vector<1x8x2xf32> to vector<8x2xf32>
    %186 = vector.extract_strided_slice %185 {offsets = [0, 0], sizes = [8, 1], strides = [1, 1]} : vector<8x2xf32> to vector<8x1xf32>
    %cst_61 = arith.constant 5.000000e-01 : f32
    %187 = vector.broadcast %cst_61 : f32 to vector<8x1xf32>
    %188 = arith.divf %186, %187 : vector<8x1xf32>
    %189 = vector.extract_strided_slice %185 {offsets = [0, 1], sizes = [8, 1], strides = [1, 1]} : vector<8x2xf32> to vector<8x1xf32>
    %cst_62 = arith.constant 1.000000e+01 : f32
    %190 = vector.broadcast %cst_62 : f32 to vector<8x1xf32>
    %191 = arith.addf %189, %190 : vector<8x1xf32>
    %cst_63 = arith.constant 5.000000e-01 : f32
    %192 = vector.broadcast %cst_63 : f32 to vector<8x1xf32>
    %193 = arith.divf %191, %192 : vector<8x1xf32>
    %cst_64 = arith.constant 0.000000e+00 : f32
    %194 = vector.broadcast %cst_64 : f32 to vector<8x200xf32>
    %cst_65 = arith.constant 9.800000e+01 : f32
    %195 = vector.broadcast %cst_65 : f32 to vector<8x1xf32>
    %196 = arith.addf %188, %195 : vector<8x1xf32>
    %197 = arith.fptosi %196 : vector<8x1xf32> to vector<8x1xi32>
    %c0_i32_66 = arith.constant 0 : i32
    %c199_i32_67 = arith.constant 199 : i32
    %198 = vector.broadcast %c0_i32_66 : i32 to vector<8x1xi32>
    %199 = arith.maxsi %198, %197 : vector<8x1xi32>
    %200 = vector.broadcast %c199_i32_67 : i32 to vector<8x1xi32>
    %201 = arith.minsi %200, %199 : vector<8x1xi32>
    %202 = vector.broadcast %201 : vector<8x1xi32> to vector<8x200xi32>
    %203 = arith.cmpi eq, %0, %202 : vector<8x200xi32>
    %204 = arith.extui %203 : vector<8x200xi1> to vector<8x200xi32>
    %205 = arith.sitofp %204 : vector<8x200xi32> to vector<8x200xf32>
    %206 = arith.addf %194, %205 : vector<8x200xf32>
    %cst_68 = arith.constant 9.900000e+01 : f32
    %207 = vector.broadcast %cst_68 : f32 to vector<8x1xf32>
    %208 = arith.addf %188, %207 : vector<8x1xf32>
    %209 = arith.fptosi %208 : vector<8x1xf32> to vector<8x1xi32>
    %c0_i32_69 = arith.constant 0 : i32
    %c199_i32_70 = arith.constant 199 : i32
    %210 = vector.broadcast %c0_i32_69 : i32 to vector<8x1xi32>
    %211 = arith.maxsi %210, %209 : vector<8x1xi32>
    %212 = vector.broadcast %c199_i32_70 : i32 to vector<8x1xi32>
    %213 = arith.minsi %212, %211 : vector<8x1xi32>
    %214 = vector.broadcast %213 : vector<8x1xi32> to vector<8x200xi32>
    %215 = arith.cmpi eq, %0, %214 : vector<8x200xi32>
    %216 = arith.extui %215 : vector<8x200xi1> to vector<8x200xi32>
    %217 = arith.sitofp %216 : vector<8x200xi32> to vector<8x200xf32>
    %218 = arith.addf %206, %217 : vector<8x200xf32>
    %cst_71 = arith.constant 1.000000e+02 : f32
    %219 = vector.broadcast %cst_71 : f32 to vector<8x1xf32>
    %220 = arith.addf %188, %219 : vector<8x1xf32>
    %221 = arith.fptosi %220 : vector<8x1xf32> to vector<8x1xi32>
    %c0_i32_72 = arith.constant 0 : i32
    %c199_i32_73 = arith.constant 199 : i32
    %222 = vector.broadcast %c0_i32_72 : i32 to vector<8x1xi32>
    %223 = arith.maxsi %222, %221 : vector<8x1xi32>
    %224 = vector.broadcast %c199_i32_73 : i32 to vector<8x1xi32>
    %225 = arith.minsi %224, %223 : vector<8x1xi32>
    %226 = vector.broadcast %225 : vector<8x1xi32> to vector<8x200xi32>
    %227 = arith.cmpi eq, %0, %226 : vector<8x200xi32>
    %228 = arith.extui %227 : vector<8x200xi1> to vector<8x200xi32>
    %229 = arith.sitofp %228 : vector<8x200xi32> to vector<8x200xf32>
    %230 = arith.addf %218, %229 : vector<8x200xf32>
    %cst_74 = arith.constant 1.010000e+02 : f32
    %231 = vector.broadcast %cst_74 : f32 to vector<8x1xf32>
    %232 = arith.addf %188, %231 : vector<8x1xf32>
    %233 = arith.fptosi %232 : vector<8x1xf32> to vector<8x1xi32>
    %c0_i32_75 = arith.constant 0 : i32
    %c199_i32_76 = arith.constant 199 : i32
    %234 = vector.broadcast %c0_i32_75 : i32 to vector<8x1xi32>
    %235 = arith.maxsi %234, %233 : vector<8x1xi32>
    %236 = vector.broadcast %c199_i32_76 : i32 to vector<8x1xi32>
    %237 = arith.minsi %236, %235 : vector<8x1xi32>
    %238 = vector.broadcast %237 : vector<8x1xi32> to vector<8x200xi32>
    %239 = arith.cmpi eq, %0, %238 : vector<8x200xi32>
    %240 = arith.extui %239 : vector<8x200xi1> to vector<8x200xi32>
    %241 = arith.sitofp %240 : vector<8x200xi32> to vector<8x200xf32>
    %242 = arith.addf %230, %241 : vector<8x200xf32>
    %cst_77 = arith.constant 0.000000e+00 : f32
    %243 = vector.broadcast %cst_77 : f32 to vector<8x256xf32>
    %cst_78 = arith.constant 9.700000e+01 : f32
    %244 = vector.broadcast %cst_78 : f32 to vector<8x1xf32>
    %245 = arith.addf %193, %244 : vector<8x1xf32>
    %246 = arith.fptosi %245 : vector<8x1xf32> to vector<8x1xi32>
    %c0_i32_79 = arith.constant 0 : i32
    %c199_i32_80 = arith.constant 199 : i32
    %247 = vector.broadcast %c0_i32_79 : i32 to vector<8x1xi32>
    %248 = arith.maxsi %247, %246 : vector<8x1xi32>
    %249 = vector.broadcast %c199_i32_80 : i32 to vector<8x1xi32>
    %250 = arith.minsi %249, %248 : vector<8x1xi32>
    %251 = vector.broadcast %250 : vector<8x1xi32> to vector<8x256xi32>
    %252 = arith.cmpi eq, %1, %251 : vector<8x256xi32>
    %253 = arith.extui %252 : vector<8x256xi1> to vector<8x256xi32>
    %254 = arith.sitofp %253 : vector<8x256xi32> to vector<8x256xf32>
    %255 = arith.addf %243, %254 : vector<8x256xf32>
    %cst_81 = arith.constant 9.800000e+01 : f32
    %256 = vector.broadcast %cst_81 : f32 to vector<8x1xf32>
    %257 = arith.addf %193, %256 : vector<8x1xf32>
    %258 = arith.fptosi %257 : vector<8x1xf32> to vector<8x1xi32>
    %c0_i32_82 = arith.constant 0 : i32
    %c199_i32_83 = arith.constant 199 : i32
    %259 = vector.broadcast %c0_i32_82 : i32 to vector<8x1xi32>
    %260 = arith.maxsi %259, %258 : vector<8x1xi32>
    %261 = vector.broadcast %c199_i32_83 : i32 to vector<8x1xi32>
    %262 = arith.minsi %261, %260 : vector<8x1xi32>
    %263 = vector.broadcast %262 : vector<8x1xi32> to vector<8x256xi32>
    %264 = arith.cmpi eq, %1, %263 : vector<8x256xi32>
    %265 = arith.extui %264 : vector<8x256xi1> to vector<8x256xi32>
    %266 = arith.sitofp %265 : vector<8x256xi32> to vector<8x256xf32>
    %267 = arith.addf %255, %266 : vector<8x256xf32>
    %cst_84 = arith.constant 9.900000e+01 : f32
    %268 = vector.broadcast %cst_84 : f32 to vector<8x1xf32>
    %269 = arith.addf %193, %268 : vector<8x1xf32>
    %270 = arith.fptosi %269 : vector<8x1xf32> to vector<8x1xi32>
    %c0_i32_85 = arith.constant 0 : i32
    %c199_i32_86 = arith.constant 199 : i32
    %271 = vector.broadcast %c0_i32_85 : i32 to vector<8x1xi32>
    %272 = arith.maxsi %271, %270 : vector<8x1xi32>
    %273 = vector.broadcast %c199_i32_86 : i32 to vector<8x1xi32>
    %274 = arith.minsi %273, %272 : vector<8x1xi32>
    %275 = vector.broadcast %274 : vector<8x1xi32> to vector<8x256xi32>
    %276 = arith.cmpi eq, %1, %275 : vector<8x256xi32>
    %277 = arith.extui %276 : vector<8x256xi1> to vector<8x256xi32>
    %278 = arith.sitofp %277 : vector<8x256xi32> to vector<8x256xf32>
    %279 = arith.addf %267, %278 : vector<8x256xf32>
    %cst_87 = arith.constant 1.000000e+02 : f32
    %280 = vector.broadcast %cst_87 : f32 to vector<8x1xf32>
    %281 = arith.addf %193, %280 : vector<8x1xf32>
    %282 = arith.fptosi %281 : vector<8x1xf32> to vector<8x1xi32>
    %c0_i32_88 = arith.constant 0 : i32
    %c199_i32_89 = arith.constant 199 : i32
    %283 = vector.broadcast %c0_i32_88 : i32 to vector<8x1xi32>
    %284 = arith.maxsi %283, %282 : vector<8x1xi32>
    %285 = vector.broadcast %c199_i32_89 : i32 to vector<8x1xi32>
    %286 = arith.minsi %285, %284 : vector<8x1xi32>
    %287 = vector.broadcast %286 : vector<8x1xi32> to vector<8x256xi32>
    %288 = arith.cmpi eq, %1, %287 : vector<8x256xi32>
    %289 = arith.extui %288 : vector<8x256xi1> to vector<8x256xi32>
    %290 = arith.sitofp %289 : vector<8x256xi32> to vector<8x256xf32>
    %291 = arith.addf %279, %290 : vector<8x256xf32>
    %cst_90 = arith.constant 1.010000e+02 : f32
    %292 = vector.broadcast %cst_90 : f32 to vector<8x1xf32>
    %293 = arith.addf %193, %292 : vector<8x1xf32>
    %294 = arith.fptosi %293 : vector<8x1xf32> to vector<8x1xi32>
    %c0_i32_91 = arith.constant 0 : i32
    %c199_i32_92 = arith.constant 199 : i32
    %295 = vector.broadcast %c0_i32_91 : i32 to vector<8x1xi32>
    %296 = arith.maxsi %295, %294 : vector<8x1xi32>
    %297 = vector.broadcast %c199_i32_92 : i32 to vector<8x1xi32>
    %298 = arith.minsi %297, %296 : vector<8x1xi32>
    %299 = vector.broadcast %298 : vector<8x1xi32> to vector<8x256xi32>
    %300 = arith.cmpi eq, %1, %299 : vector<8x256xi32>
    %301 = arith.extui %300 : vector<8x256xi1> to vector<8x256xi32>
    %302 = arith.sitofp %301 : vector<8x256xi32> to vector<8x256xf32>
    %303 = arith.addf %291, %302 : vector<8x256xf32>
    %cst_93 = arith.constant 1.020000e+02 : f32
    %304 = vector.broadcast %cst_93 : f32 to vector<8x1xf32>
    %305 = arith.addf %193, %304 : vector<8x1xf32>
    %306 = arith.fptosi %305 : vector<8x1xf32> to vector<8x1xi32>
    %c0_i32_94 = arith.constant 0 : i32
    %c199_i32_95 = arith.constant 199 : i32
    %307 = vector.broadcast %c0_i32_94 : i32 to vector<8x1xi32>
    %308 = arith.maxsi %307, %306 : vector<8x1xi32>
    %309 = vector.broadcast %c199_i32_95 : i32 to vector<8x1xi32>
    %310 = arith.minsi %309, %308 : vector<8x1xi32>
    %311 = vector.broadcast %310 : vector<8x1xi32> to vector<8x256xi32>
    %312 = arith.cmpi eq, %1, %311 : vector<8x256xi32>
    %313 = arith.extui %312 : vector<8x256xi1> to vector<8x256xi32>
    %314 = arith.sitofp %313 : vector<8x256xi32> to vector<8x256xf32>
    %315 = arith.addf %303, %314 : vector<8x256xf32>
    %cst_96 = arith.constant 1.030000e+02 : f32
    %316 = vector.broadcast %cst_96 : f32 to vector<8x1xf32>
    %317 = arith.addf %193, %316 : vector<8x1xf32>
    %318 = arith.fptosi %317 : vector<8x1xf32> to vector<8x1xi32>
    %c0_i32_97 = arith.constant 0 : i32
    %c199_i32_98 = arith.constant 199 : i32
    %319 = vector.broadcast %c0_i32_97 : i32 to vector<8x1xi32>
    %320 = arith.maxsi %319, %318 : vector<8x1xi32>
    %321 = vector.broadcast %c199_i32_98 : i32 to vector<8x1xi32>
    %322 = arith.minsi %321, %320 : vector<8x1xi32>
    %323 = vector.broadcast %322 : vector<8x1xi32> to vector<8x256xi32>
    %324 = arith.cmpi eq, %1, %323 : vector<8x256xi32>
    %325 = arith.extui %324 : vector<8x256xi1> to vector<8x256xi32>
    %326 = arith.sitofp %325 : vector<8x256xi32> to vector<8x256xf32>
    %327 = arith.addf %315, %326 : vector<8x256xf32>
    %cst_99 = arith.constant 1.040000e+02 : f32
    %328 = vector.broadcast %cst_99 : f32 to vector<8x1xf32>
    %329 = arith.addf %193, %328 : vector<8x1xf32>
    %330 = arith.fptosi %329 : vector<8x1xf32> to vector<8x1xi32>
    %c0_i32_100 = arith.constant 0 : i32
    %c199_i32_101 = arith.constant 199 : i32
    %331 = vector.broadcast %c0_i32_100 : i32 to vector<8x1xi32>
    %332 = arith.maxsi %331, %330 : vector<8x1xi32>
    %333 = vector.broadcast %c199_i32_101 : i32 to vector<8x1xi32>
    %334 = arith.minsi %333, %332 : vector<8x1xi32>
    %335 = vector.broadcast %334 : vector<8x1xi32> to vector<8x256xi32>
    %336 = arith.cmpi eq, %1, %335 : vector<8x256xi32>
    %337 = arith.extui %336 : vector<8x256xi1> to vector<8x256xi32>
    %338 = arith.sitofp %337 : vector<8x256xi32> to vector<8x256xf32>
    %339 = arith.addf %327, %338 : vector<8x256xf32>
    %340 = arith.truncf %242 : vector<8x200xf32> to vector<8x200xbf16>
    %cst_102 = arith.constant dense<0.000000e+00> : vector<8x256xf32>
    %341 = tpu.matmul %340, %183, %cst_102 {dimension_numbers = #tpu.dot_dimension_numbers<[1], [0], [0], [1], [0, 0, 1, 1], [], []>} : vector<8x200xbf16>, vector<200x256xbf16>, vector<8x256xf32> -> vector<8x256xf32>
    %342 = arith.mulf %341, %339 : vector<8x256xf32>
    %cst_103 = arith.constant dense<0.000000e+00> : vector<8xf32>
    %343 = vector.multi_reduction <add>, %342, %cst_103 [1] : vector<8x256xf32> to vector<8xf32>
    %cst_104 = arith.constant 1.000000e+00 : f32
    %344 = vector.broadcast %cst_104 : f32 to vector<8xf32>
    %345 = arith.mulf %343, %344 : vector<8xf32>
    %346 = vector.shape_cast %345 : vector<8xf32> to vector<1x8xf32>
    %cst_105 = arith.constant 0.000000e+00 : f32
    %347 = vector.broadcast %cst_105 : f32 to vector<1x120xf32>
    %348 = tpu.concatenate %346, %347 in 1 : vector<1x8xf32>, vector<1x120xf32> -> vector<1x128xf32>
    %c1_106 = arith.constant 1 : index
    %c0_107 = arith.constant 0 : index
    %c0_108 = arith.constant 0 : index
    %349 = vector.load %arg4[%c1_106, %c0_107, %c0_108] : memref<2x1x128xf32, #tpu.memory_space<vmem>>, vector<1x1x128xf32>
    %350 = vector.shape_cast %349 : vector<1x1x128xf32> to vector<1x128xf32>
    %351 = vector.shape_cast %348 : vector<1x128xf32> to vector<1x1x128xf32>
    tpu.vector_store %arg4[%c1_106, %c0_107, %c0_108], %351 {strides = array<i32>} : memref<2x1x128xf32, #tpu.memory_space<vmem>>, vector<1x1x128xf32>,
    return
  }
  func.func @transform_0(%arg0: i32) -> (i32, i32, i32) {
    %c0_i32 = arith.constant 0 : i32
    %c0_i32_0 = arith.constant 0 : i32
    %c0_i32_1 = arith.constant 0 : i32
    return %arg0, %c0_i32, %c0_i32_0 : i32, i32, i32
  }
  func.func @transform_1(%arg0: i32) -> (i32, i32, i32) {
    %c0_i32 = arith.constant 0 : i32
    %c0_i32_0 = arith.constant 0 : i32
    %c0_i32_1 = arith.constant 0 : i32
    return %arg0, %c0_i32, %c0_i32_0 : i32, i32, i32
  }
  func.func @transform_2(%arg0: i32) -> (i32, i32, i32) {
    %c0_i32 = arith.constant 0 : i32
    %c0_i32_0 = arith.constant 0 : i32
    %c0_i32_1 = arith.constant 0 : i32
    return %arg0, %c0_i32, %c0_i32_0 : i32, i32, i32
  }
  func.func @transform_3(%arg0: i32) -> (i32, i32, i32) {
    %c0_i32 = arith.constant 0 : i32
    %c0_i32_0 = arith.constant 0 : i32
    %c0_i32_1 = arith.constant 0 : i32
    return %arg0, %c0_i32, %c0_i32_0 : i32, i32, i32
  }
}

</mosaic_0001>

<bundles_post_ra>
// kernel: tpu_custom_call.1
= control target key start
LH: loop header
LB: loop body
LE: loop exit
PB: predicated region body
PF: predicated region fallthrough
CT: control target
= control target key end

     0   :  { %8 = vsyncpa [#allocation3], 0  ;;  %s1544_s0 = inlined_call_operand.vmem [shape: f32[2,8,2], index: 0, kind: input, shape index: {}]   ;;  %s1545_s1 = inlined_call_operand.hbm [shape: s8[2,200,256], index: 1, kind: input, shape index: {}]   ;;  %s1546_s2 = inlined_call_operand.hbm [shape: s8[2,200,256], index: 2, kind: input, shape index: {}]   ;;  %s1547_s3 = inlined_call_operand.hbm [shape: f32[2,1,128], index: 3, kind: output, shape index: {}]  }
   0x1   :  { %9 = vsyncpa [#allocation6], 0 }
   0x2   :  { %10 = vsyncpa [#allocation4], 0  ;;  %s1352_s12 = smov [#allocation2]  }
   0x3   :  { %s18_s13 = sshll.u32 %s1352_s12, 4  ;;  %s19_s13 = int_to_ptr.vmem [resolvable:$true] %s18_s13 }
   0x4   :  { %s1294_s14 = scalar_lea.vmem %s19_s13, 3200  ;;  %p1299_p1 = scmp.lt.s32.totalorder %s19_s13, %s19_s13 }
   0x5   :  { %p1295_p0 = scmp.ne.s32.totalorder %s19_s13, %s1294_s14  ;;  %p1300_p2 = scmp.lt.s32.totalorder %s1294_s14, %s1294_s14 }
   0x7   :  { %p1301_p3 = por %p1300_p2, %p1299_p1 }
   0x9   :  { %p1302_p4 = pnand %p1301_p3, %p1295_p0 }
   0xb   :  { %1305 = shalt.err (!%p1302_p4)
}
   0xc   :  { %s1353_s15 = smov 64   ;;  %s1354_s16 = smov 4  }
   0xd   :  { %24 = dma.hbm_to_vmem [thread:$0]  %s1545_s1, 3200, %s19_s13, [#allocation3], %s1353_s15, %s1353_s15, %s1354_s16  }
   0xe   :  { %s1355_s19 = smov [#allocation5]  }
   0xf   :  { %s30_s20 = sshll.u32 %s1355_s19, 4  ;;  %s31_s20 = int_to_ptr.vmem [resolvable:$true] %s30_s20 }
  0x10   :  { %s1314_s21 = scalar_lea.vmem %s31_s20, 3200  ;;  %p1319_p6 = scmp.lt.s32.totalorder %s31_s20, %s31_s20 }
  0x11   :  { %p1315_p5 = scmp.ne.s32.totalorder %s31_s20, %s1314_s21  ;;  %p1320_p7 = scmp.lt.s32.totalorder %s1314_s21, %s1314_s21 }
  0x13   :  { %p1321_p8 = por %p1320_p7, %p1319_p6 }
  0x15   :  { %p1322_p9 = pnand %p1321_p8, %p1315_p5 }
  0x17   :  { %1325 = shalt.err (!%p1322_p9)
}
  0x18   :  { %36 = dma.hbm_to_vmem [thread:$0]  %s1546_s2, 3200, %s31_s20, [#allocation6], %s1353_s15, %s1353_s15, %s1354_s16  }
  0x19   :  { %1346 = dma.done.wait [#allocation3], 3200  }
  0x1a   :  { %1347 = vsyncadd [#allocation3], 4294964096 }
  0x1b   :  { %1348 = dma.done.wait [#allocation6], 3200  }
  0x1c   :  { %1349 = vsyncadd [#allocation6], 4294964096  ;;  %v1356_v0 = vmov 0   ;;  %v1171_v1 = vld [vmem:[%s1544_s0 + $0x8] sm:$0xff]  ;;  %v172_v2 = vld [vmem:[%s1544_s0] sm:$0xff]  ;;  %s1359_s0 = smov [#allocation7]  }
  0x1d   :  { %1283 = vset.pattern.permute.xlu1 %v1356_v0  ;;  %1282 = vset.pattern.permute.xlu0 %v1356_v0  ;;  %v1394_v3 = vld [vmem:[#allocation2 + $0x38] sm:$0xff]   ;;  %v703_v4 = vmul.f32 2.0, %v1171_v1  ;;  %v704_v5 = vadd.f32 10.0, %v1171_v1  ;;  %v174_v6 = vmul.f32 2.0, %v172_v2  ;;  %v1396_v7 = vld [vmem:[#allocation5 + $0x38] sm:$0xff]   ;;  %v1398_v8 = vadd.f32 10.0, %v172_v2 }
  0x1e   :  { %v86_v9 = vunpack.c.l.s8.bf16 %v1394_v3  ;;  %v87_v10 = vunpack.c.h.s8.bf16 %v1394_v3  ;;  %v136_v11 = vunpack.c.l.s8.bf16 %v1396_v7  ;;  %v137_v15 = vunpack.c.h.s8.bf16 %v1396_v7  ;;  %v589_v50 = vld [vmem:[#allocation2 + $0x9c] sm:$0xff]   ;;  %v640_v51 = vld [vmem:[#allocation5 + $0x9c] sm:$0xff]   ;;  %v59_v54 = vld [vmem:[#allocation2 + $0x30] sm:$0xff]   ;;  %s1106_s2 = sshll.u32 %s1359_s0, 4  ;;  %s1107_s2 = int_to_ptr.vmem [resolvable:$true] %s1106_s2 }
  0x1f   :  { %v1403_v12 = vmul.f32 2.0, %v704_v5  ;;  %v706_v13 = vadd.f32 98.0, %v703_v4  ;;  %v177_v14 = vadd.f32 98.0, %v174_v6  ;;  %v723_v16 = vadd.f32 99.0, %v703_v4  ;;  %v109_v59 = vld [vmem:[#allocation5 + $0x30] sm:$0xff]   ;;  %s1326_s27 = scalar_lea.vmem %s1107_s2, 32  ;;  %p1331_p11 = scmp.lt.s32.totalorder %s1107_s2, %s1107_s2 }
  0x20   :  { %v194_v17 = vadd.f32 99.0, %v174_v6  ;;  %v740_v18 = vadd.f32 100.0, %v703_v4  ;;  %v211_v19 = vadd.f32 100.0, %v174_v6  ;;  %v757_v22 = vadd.f32 101.0, %v703_v4  ;;  %v587_v0 = vld [vmem:[#allocation2 + $0x94] sm:$0xff]   ;;  %v638_v1 = vld [vmem:[#allocation5 + $0x94] sm:$0xff]   ;;  %p1327_p10 = scmp.ne.s32.totalorder %s1107_s2, %s1326_s27  ;;  %p1332_p12 = scmp.lt.s32.totalorder %s1326_s27, %s1326_s27 }
  0x21   :  { %v1248_v20 = vtrunc.f32 %v706_v13  ;;  %v1224_v21 = vtrunc.f32 %v177_v14  ;;  %v228_v23 = vadd.f32 101.0, %v174_v6  ;;  %v1250_v24 = vtrunc.f32 %v723_v16 }
  0x22   :  { %v1226_v25 = vtrunc.f32 %v194_v17  ;;  %v1252_v26 = vtrunc.f32 %v740_v18  ;;  %v1228_v27 = vtrunc.f32 %v211_v19  ;;  %v1254_v30 = vtrunc.f32 %v757_v22  ;;  %v107_v17 = vld [vmem:[#allocation5 + $0x28] sm:$0xff]   ;;  %p1333_p13 = por %p1332_p12, %p1331_p11 }
  0x23   :  { %v1249_v28 = vcvt.f32.s32 %v1248_v20  ;;  %v1225_v29 = vcvt.f32.s32 %v1224_v21  ;;  %v1230_v31 = vtrunc.f32 %v228_v23  ;;  %v1251_v32 = vcvt.f32.s32 %v1250_v24  ;;  %v585_v22 = vld [vmem:[#allocation2 + $0x8c] sm:$0xff]  }
  0x24   :  { %v1227_v33 = vcvt.f32.s32 %v1226_v25  ;;  %v1253_v34 = vcvt.f32.s32 %v1252_v26  ;;  %v1229_v35 = vcvt.f32.s32 %v1228_v27  ;;  %v1255_v36 = vcvt.f32.s32 %v1254_v30  ;;  %v636_v27 = vld [vmem:[#allocation5 + $0x8c] sm:$0xff]   ;;  %p1334_p0 = pnand %p1333_p13, %p1327_p10 }
  0x25   :  { %vm708_vm0 = vcmp.gt.s32.totalorder %v1249_v28, 0  ;;  %vm179_vm1 = vcmp.gt.s32.totalorder %v1225_v29, 0  ;;  %v1231_v37 = vcvt.f32.s32 %v1230_v31  ;;  %vm725_vm2 = vcmp.gt.s32.totalorder %v1251_v32, 0 }
  0x26   :  { %v709_v38 = vsel %vm708_vm0, %v1249_v28, 0  ;;  %v180_v39 = vsel %vm179_vm1, %v1225_v29, 0  ;;  %vm196_vm3 = vcmp.gt.s32.totalorder %v1227_v33, 0  ;;  %v726_v40 = vsel %vm725_vm2, %v1251_v32, 0  ;;  %v55_v32 = vld [vmem:[#allocation2 + $0x20] sm:$0xff]  }
  0x27   :  { %vm710_vm4 = vcmp.lt.s32.totalorder %v709_v38, 199  ;;  %vm181_vm5 = vcmp.lt.s32.totalorder %v180_v39, 199  ;;  %v197_v41 = vsel %vm196_vm3, %v1227_v33, 0  ;;  %vm727_vm6 = vcmp.lt.s32.totalorder %v726_v40, 199  ;;  %v105_v33 = vld [vmem:[#allocation5 + $0x20] sm:$0xff]  }
  0x28   :  { %v711_v42 = vsel %vm710_vm4, %v709_v38, 199  ;;  %v182_v43 = vsel %vm181_vm5, %v180_v39, 199  ;;  %vm198_vm7 = vcmp.lt.s32.totalorder %v197_v41, 199  ;;  %v728_v44 = vsel %vm727_vm6, %v726_v40, 199 }
  0x29   :  { %713 = vperm.xlu1 %1283, %v711_v42   ;;  %184 = vperm.xlu0 %1282, %v182_v43   ;;  %v199_v45 = vsel %vm198_vm7, %v197_v41, 199  ;;  %vm742_vm8 = vcmp.gt.s32.totalorder %v1253_v34, 0  ;;  %vm213_vm9 = vcmp.gt.s32.totalorder %v1229_v35, 0  ;;  %vm759_vm10 = vcmp.gt.s32.totalorder %v1255_v36, 0  ;;  %v583_v42 = vld [vmem:[#allocation2 + $0x84] sm:$0xff]  }
  0x2a   :  { %v743_v46 = vsel %vm742_vm8, %v1253_v34, 0  ;;  %v214_v47 = vsel %vm213_vm9, %v1229_v35, 0  ;;  %vm230_vm11 = vcmp.gt.s32.totalorder %v1231_v37, 0  ;;  %v760_v48 = vsel %vm759_vm10, %v1255_v36, 0 }
  0x2b   :  { %vm744_vm12 = vcmp.lt.s32.totalorder %v743_v46, 199  ;;  %vm215_vm13 = vcmp.lt.s32.totalorder %v214_v47, 199  ;;  %v231_v49 = vsel %vm230_vm11, %v1231_v37, 0  ;;  %vm761_vm14 = vcmp.lt.s32.totalorder %v760_v48, 199 }
  0x2c   :  { %v745_v52 = vsel %vm744_vm12, %v743_v46, 199  ;;  %v216_v53 = vsel %vm215_vm13, %v214_v47, 199  ;;  %vm232_vm15 = vcmp.lt.s32.totalorder %v231_v49, 199  ;;  %v762_v55 = vsel %vm761_vm14, %v760_v48, 199  ;;  %v634_v47 = vld [vmem:[#allocation5 + $0x84] sm:$0xff]  }
  0x2d   :  { %730 = vperm.xlu1 %1283, %v728_v44   ;;  %201 = vperm.xlu0 %1282, %v199_v45   ;;  %v233_v56 = vsel %vm232_vm15, %v231_v49, 199  ;;  %v161_v57 = vmul.bf16 %v136_v11, %v86_v9  ;;  %v162_v58 = vmul.bf16 %v137_v15, %v87_v10  ;;  %v614_v60 = vunpack.c.l.s8.bf16 %v589_v50  ;;  %v57_v11 = vld [vmem:[#allocation2 + $0x28] sm:$0xff]  }
  0x2e   :  { %v615_v61 = vunpack.c.h.s8.bf16 %v589_v50  ;;  %v665_v62 = vunpack.c.l.s8.bf16 %v640_v51  ;;  %v666_v63 = vunpack.c.h.s8.bf16 %v640_v51  ;;  %v84_v5 = vunpack.c.l.s8.bf16 %v59_v54 }
  0x2f   :  { %v1158_v2 = vcombine.high %v161_v57, %v162_v58  ;;  %v1157_v4 = vcombine.low %v161_v57, %v162_v58  ;;  %v85_v6 = vunpack.c.h.s8.bf16 %v59_v54  ;;  %v134_v16 = vunpack.c.l.s8.bf16 %v109_v59  ;;  %v103_v57 = vld [vmem:[#allocation5 + $0x18] sm:$0xff]  }
  0x30   :  { %v690_v13 = vmul.bf16 %v665_v62, %v614_v60  ;;  %v691_v14 = vmul.bf16 %v666_v63, %v615_v61  ;;  %v135_v9 = vunpack.c.h.s8.bf16 %v109_v59  ;;  %v612_v3 = vunpack.c.l.s8.bf16 %v587_v0  ;;  %v581_v62 = vld [vmem:[#allocation2 + $0x7c] sm:$0xff]   ;;  %v632_v63 = vld [vmem:[#allocation5 + $0x7c] sm:$0xff]  }
  0x31   :  { %747 = vperm.xlu1 %1283, %v745_v52   ;;  %218 = vperm.xlu0 %1282, %v216_v53   ;;  %v613_v7 = vunpack.c.h.s8.bf16 %v587_v0  ;;  %v663_v10 = vunpack.c.l.s8.bf16 %v638_v1  ;;  %v664_v15 = vunpack.c.h.s8.bf16 %v638_v1  ;;  %v159_v20 = vmul.bf16 %v134_v16, %v84_v5  ;;  %v53_v52 = vld [vmem:[#allocation2 + $0x18] sm:$0xff]   ;;  %v51_v16 = vld [vmem:[#allocation2 + $0x10] sm:$0xff]  }
  0x32   :  { %519 = vmatprep.subr.bf16.mxu0 %v1158_v2  ;;  %v1211_v18 = vcombine.high %v690_v13, %v691_v14  ;;  %v1210_v19 = vcombine.low %v690_v13, %v691_v14  ;;  %v160_v21 = vmul.bf16 %v135_v9, %v85_v6  ;;  %v82_v25 = vunpack.c.l.s8.bf16 %v57_v11 }
  0x33   :  { %520 = vmatpush1.bf16.msra.mxu0 %v1157_v4  ;;  %v688_v23 = vmul.bf16 %v663_v10, %v612_v3  ;;  %v689_v24 = vmul.bf16 %v664_v15, %v613_v7  ;;  %v83_v26 = vunpack.c.h.s8.bf16 %v57_v11  ;;  %v132_v30 = vunpack.c.l.s8.bf16 %v107_v17  ;;  %v101_v10 = vld [vmem:[#allocation5 + $0x10] sm:$0xff]  }
  0x34   :  { %1046 = vmatprep.subr.bf16.mxu1 %v1211_v18  ;;  %v1156_v28 = vcombine.high %v159_v20, %v160_v21  ;;  %v1155_v29 = vcombine.low %v159_v20, %v160_v21  ;;  %v133_v31 = vunpack.c.h.s8.bf16 %v107_v17  ;;  %v610_v36 = vunpack.c.l.s8.bf16 %v585_v22  ;;  %v579_v20 = vld [vmem:[#allocation2 + $0x74] sm:$0xff]  }
  0x35   :  { %764 = vperm.xlu1 %1283, %v762_v55   ;;  %235 = vperm.xlu0 %1282, %v233_v56   ;;  %v1209_v34 = vcombine.high %v688_v23, %v689_v24  ;;  %v1208_v35 = vcombine.low %v688_v23, %v689_v24  ;;  %v611_v37 = vunpack.c.h.s8.bf16 %v585_v22  ;;  %v157_v38 = vmul.bf16 %v132_v30, %v82_v25  ;;  %v630_v25 = vld [vmem:[#allocation5 + $0x74] sm:$0xff]   ;;  %v49_v30 = vld [vmem:[#allocation2 + $0x8] sm:$0xff]  }
  0x36   :  { %1047 = vmatpush1.bf16.msra.mxu1 %v1210_v19  ;;  %521 = vmatprep.subr.bf16.mxu0 %v1156_v28  ;;  %v158_v39 = vmul.bf16 %v133_v31, %v83_v26  ;;  %v661_v40 = vunpack.c.l.s8.bf16 %v636_v27  ;;  %v662_v41 = vunpack.c.h.s8.bf16 %v636_v27  ;;  %v80_v43 = vunpack.c.l.s8.bf16 %v55_v32  ;;  %v99_v31 = vld [vmem:[#allocation5 + $0x8] sm:$0xff]  }
  0x37   :  { %1048 = vmatprep.subr.bf16.mxu1 %v1209_v34  ;;  %522 = vmatpush1.bf16.msra.mxu0 %v1155_v29  ;;  %v81_v44 = vunpack.c.h.s8.bf16 %v55_v32  ;;  %v130_v45 = vunpack.c.l.s8.bf16 %v105_v33  ;;  %v131_v46 = vunpack.c.h.s8.bf16 %v105_v33  ;;  %v608_v55 = vunpack.c.l.s8.bf16 %v583_v42 }
  0x38   :  { %v1154_v48 = vcombine.high %v157_v38, %v158_v39  ;;  %v686_v49 = vmul.bf16 %v661_v40, %v610_v36  ;;  %v687_v50 = vmul.bf16 %v662_v41, %v611_v37  ;;  %v1153_v51 = vcombine.low %v157_v38, %v158_v39  ;;  %v577_v40 = vld [vmem:[#allocation2 + $0x6c] sm:$0xff]  }
  0x39   :  { %v155_v53 = vmul.bf16 %v130_v45, %v80_v43  ;;  %v156_v54 = vmul.bf16 %v131_v46, %v81_v44  ;;  %v609_v56 = vunpack.c.h.s8.bf16 %v583_v42  ;;  %v659_v60 = vunpack.c.l.s8.bf16 %v634_v47  ;;  %v628_v45 = vld [vmem:[#allocation5 + $0x6c] sm:$0xff]  }
  0x3a   :  { %1049 = vmatpush1.bf16.msra.mxu1 %v1208_v35  ;;  %523 = vmatprep.subr.bf16.mxu0 %v1154_v48  ;;  %v1207_v58 = vcombine.high %v686_v49, %v687_v50  ;;  %v1206_v59 = vcombine.low %v686_v49, %v687_v50  ;;  %v660_v61 = vunpack.c.h.s8.bf16 %v634_v47  ;;  %v78_v2 = vunpack.c.l.s8.bf16 %v53_v52  ;;  %v47_v50 = vld [vmem:[#allocation2] sm:$0xff]  }
  0x3b   :  { %524 = vmatpush1.bf16.msra.mxu0 %v1153_v51  ;;  %v1152_v0 = vcombine.high %v155_v53, %v156_v54  ;;  %v1151_v1 = vcombine.low %v155_v53, %v156_v54  ;;  %v79_v4 = vunpack.c.h.s8.bf16 %v53_v52  ;;  %v684_v5 = vmul.bf16 %v659_v60, %v608_v55  ;;  %v97_v55 = vld [vmem:[#allocation5] sm:$0xff]  }
  0x3c   :  { %1050 = vmatprep.subr.bf16.mxu1 %v1207_v58  ;;  %v685_v6 = vmul.bf16 %v660_v61, %v609_v56  ;;  %v128_v13 = vunpack.c.l.s8.bf16 %v103_v57  ;;  %v129_v14 = vunpack.c.h.s8.bf16 %v103_v57  ;;  %v606_v9 = vunpack.c.l.s8.bf16 %v581_v62  ;;  %v575_v60 = vld [vmem:[#allocation2 + $0x64] sm:$0xff]   ;;  %v626_v61 = vld [vmem:[#allocation5 + $0x64] sm:$0xff]  }
  0x3d   :  { %525 = vmatprep.subr.bf16.mxu0 %v1152_v0  ;;  %v607_v11 = vunpack.c.h.s8.bf16 %v581_v62  ;;  %v657_v3 = vunpack.c.l.s8.bf16 %v632_v63  ;;  %v658_v7 = vunpack.c.h.s8.bf16 %v632_v63  ;;  %v76_v23 = vunpack.c.l.s8.bf16 %v51_v16 }
  0x3e   :  { %1051 = vmatpush1.bf16.msra.mxu1 %v1206_v59  ;;  %v1205_v15 = vcombine.high %v684_v5, %v685_v6  ;;  %v1204_v17 = vcombine.low %v684_v5, %v685_v6  ;;  %v153_v18 = vmul.bf16 %v128_v13, %v78_v2  ;;  %v154_v19 = vmul.bf16 %v129_v14, %v79_v4  ;;  %v599_v13 = vld [vmem:[#allocation2 + $0x60] ss:$100 sps:$4 sm:$0xff]  }
  0x3f   :  { %526 = vmatpush1.bf16.msra.mxu0 %v1151_v1  ;;  %v682_v21 = vmul.bf16 %v657_v3, %v606_v9  ;;  %v683_v22 = vmul.bf16 %v658_v7, %v607_v11  ;;  %v77_v24 = vunpack.c.h.s8.bf16 %v51_v16  ;;  %v126_v28 = vunpack.c.l.s8.bf16 %v101_v10  ;;  %v650_v3 = vld [vmem:[#allocation5 + $0x60] ss:$100 sps:$4 sm:$0xff]  }
  0x40   :  { %1052 = vmatprep.subr.bf16.mxu1 %v1205_v15  ;;  %v1150_v26 = vcombine.high %v153_v18, %v154_v19  ;;  %v1149_v27 = vcombine.low %v153_v18, %v154_v19  ;;  %v127_v29 = vunpack.c.h.s8.bf16 %v101_v10  ;;  %v604_v34 = vunpack.c.l.s8.bf16 %v579_v20  ;;  %v597_v18 = vld [vmem:[#allocation2 + $0xbc] sm:$0xff]  }
  0x41   :  { %v1203_v32 = vcombine.high %v682_v21, %v683_v22  ;;  %v1202_v33 = vcombine.low %v682_v21, %v683_v22  ;;  %v605_v35 = vunpack.c.h.s8.bf16 %v579_v20  ;;  %v151_v36 = vmul.bf16 %v126_v28, %v76_v23  ;;  %v648_v22 = vld [vmem:[#allocation5 + $0xbc] sm:$0xff]  }
  0x42   :  { %1053 = vmatpush1.bf16.msra.mxu1 %v1204_v17  ;;  %527 = vmatprep.subr.bf16.mxu0 %v1150_v26  ;;  %v152_v37 = vmul.bf16 %v127_v29, %v77_v24  ;;  %v655_v38 = vunpack.c.l.s8.bf16 %v630_v25  ;;  %v656_v39 = vunpack.c.h.s8.bf16 %v630_v25  ;;  %v74_v41 = vunpack.c.l.s8.bf16 %v49_v30  ;;  %v119_v28 = vld [vmem:[#allocation5 + $0x58] sm:$0xff]  }
  0x43   :  { %1054 = vmatprep.subr.bf16.mxu1 %v1203_v32  ;;  %528 = vmatpush1.bf16.msra.mxu0 %v1149_v27  ;;  %v75_v42 = vunpack.c.h.s8.bf16 %v49_v30  ;;  %v124_v43 = vunpack.c.l.s8.bf16 %v99_v31  ;;  %v125_v44 = vunpack.c.h.s8.bf16 %v99_v31  ;;  %v602_v53 = vunpack.c.l.s8.bf16 %v577_v40  ;;  %v69_v27 = vld [vmem:[#allocation2 + $0x58] sm:$0xff]  }
  0x44   :  { %v1148_v46 = vcombine.high %v151_v36, %v152_v37  ;;  %v680_v47 = vmul.bf16 %v655_v38, %v604_v34  ;;  %v681_v48 = vmul.bf16 %v656_v39, %v605_v35  ;;  %v1147_v49 = vcombine.low %v151_v36, %v152_v37 }
  0x45   :  { %v149_v51 = vmul.bf16 %v124_v43, %v74_v41  ;;  %v150_v52 = vmul.bf16 %v125_v44, %v75_v42  ;;  %v603_v54 = vunpack.c.h.s8.bf16 %v577_v40  ;;  %v653_v58 = vunpack.c.l.s8.bf16 %v628_v45  ;;  %v595_v41 = vld [vmem:[#allocation2 + $0xb4] sm:$0xff]  }
  0x46   :  { %1055 = vmatpush1.bf16.msra.mxu1 %v1202_v33  ;;  %529 = vmatprep.subr.bf16.mxu0 %v1148_v46  ;;  %v1201_v56 = vcombine.high %v680_v47, %v681_v48  ;;  %v1200_v57 = vcombine.low %v680_v47, %v681_v48  ;;  %v654_v59 = vunpack.c.h.s8.bf16 %v628_v45  ;;  %v72_v0 = vunpack.c.l.s8.bf16 %v47_v50  ;;  %v646_v46 = vld [vmem:[#allocation5 + $0xb4] sm:$0xff]  }
  0x47   :  { %530 = vmatpush1.bf16.msra.mxu0 %v1147_v49  ;;  %v1146_v62 = vcombine.high %v149_v51, %v150_v52  ;;  %v1145_v63 = vcombine.low %v149_v51, %v150_v52  ;;  %v73_v1 = vunpack.c.h.s8.bf16 %v47_v50  ;;  %v678_v2 = vmul.bf16 %v653_v58, %v602_v53  ;;  %v67_v51 = vld [vmem:[#allocation2 + $0x50] sm:$0xff]   ;;  %v117_v52 = vld [vmem:[#allocation5 + $0x50] sm:$0xff]  }
  0x48   :  { %1056 = vmatprep.subr.bf16.mxu1 %v1201_v56  ;;  %v679_v4 = vmul.bf16 %v654_v59, %v603_v54  ;;  %v122_v5 = vunpack.c.l.s8.bf16 %v97_v55  ;;  %v123_v6 = vunpack.c.h.s8.bf16 %v97_v55  ;;  %v600_v14 = vunpack.c.l.s8.bf16 %v575_v60 }
  0x49   :  { %531 = vmatprep.subr.bf16.mxu0 %v1146_v62  ;;  %v601_v16 = vunpack.c.h.s8.bf16 %v575_v60  ;;  %v651_v9 = vunpack.c.l.s8.bf16 %v626_v61  ;;  %v652_v11 = vunpack.c.h.s8.bf16 %v626_v61  ;;  %vm512_vm0 = vcmask 1043456   ;;  %v593_v61 = vld [vmem:[#allocation2 + $0xac] sm:$0xff]  }
  0x4a   :  { %1057 = vmatpush1.bf16.msra.mxu1 %v1200_v57  ;;  %v1199_v7 = vcombine.high %v678_v2, %v679_v4  ;;  %v1198_v10 = vcombine.low %v678_v2, %v679_v4  ;;  %v147_v15 = vmul.bf16 %v122_v5, %v72_v0  ;;  %v148_v17 = vmul.bf16 %v123_v6, %v73_v1  ;;  %v644_v2 = vld [vmem:[#allocation5 + $0xac] sm:$0xff]   ;;  %v65_v4 = vld [vmem:[#allocation2 + $0x48] sm:$0xff]  }
  0x4b   :  { %532 = vmatpush1.bf16.msra.mxu0 %v1145_v63  ;;  %v676_v19 = vmul.bf16 %v651_v9, %v600_v14  ;;  %v677_v20 = vmul.bf16 %v652_v11, %v601_v16  ;;  %v624_v21 = vunpack.c.h.s8.bf16 %v599_v13  ;;  %v675_v25 = vunpack.c.h.s8.bf16 %v650_v3  ;;  %v115_v16 = vld [vmem:[#allocation5 + $0x48] sm:$0xff]  }
  0x4c   :  { %1058 = vmatprep.subr.bf16.mxu1 %v1199_v7  ;;  %v1144_v23 = vcombine.high %v147_v15, %v148_v17  ;;  %v1143_v24 = vcombine.low %v147_v15, %v148_v17  ;;  %v96_v26 = vunpack.c.l.s8.bf16 %v599_v13  ;;  %v146_v31 = vunpack.c.l.s8.bf16 %v650_v3 }
  0x4d   :  { %v1197_v29 = vcombine.high %v676_v19, %v677_v20  ;;  %v1196_v30 = vcombine.low %v676_v19, %v677_v20  ;;  %v622_v32 = vunpack.c.l.s8.bf16 %v597_v18  ;;  %v700_v33 = vmul.bf16 %v675_v25, %v624_v21  ;;  %v63_v19 = vld [vmem:[#allocation2 + $0x40] sm:$0xff]  }
  0x4e   :  { %1059 = vmatpush1.bf16.msra.mxu1 %v1198_v10  ;;  %533 = vmatprep.subr.bf16.mxu0 %v1144_v23  ;;  %v623_v34 = vunpack.c.h.s8.bf16 %v597_v18  ;;  %v673_v35 = vunpack.c.l.s8.bf16 %v648_v22  ;;  %v674_v36 = vunpack.c.h.s8.bf16 %v648_v22  ;;  %v171_v37 = vmul.bf16 %v146_v31, %v96_v26 }
  0x4f   :  { %1060 = vmatprep.subr.bf16.mxu1 %v1197_v29  ;;  %534 = vmatpush1.bf16.msra.mxu0 %v1143_v24  ;;  %v94_v38 = vunpack.c.l.s8.bf16 %v69_v27  ;;  %v95_v39 = vunpack.c.h.s8.bf16 %v69_v27  ;;  %v144_v40 = vunpack.c.l.s8.bf16 %v119_v28  ;;  %v1221_v42 = vcombine.high %v700_v33, %v700_v33  ;;  %v113_v24 = vld [vmem:[#allocation5 + $0x40] sm:$0xff]  }
  0x50   :  { %v1220_v43 = vcombine.low %v700_v33, %v700_v33  ;;  %v698_v44 = vmul.bf16 %v673_v35, %v622_v32  ;;  %v699_v45 = vmul.bf16 %v674_v36, %v623_v34  ;;  %v1168_v47 = vcombine.high %v171_v37, %v171_v37  ;;  %v591_v29 = vld [vmem:[#allocation2 + $0xa4] sm:$0xff]  }
  0x51   :  { %v1167_v48 = vcombine.low %v171_v37, %v171_v37  ;;  %v145_v49 = vunpack.c.h.s8.bf16 %v119_v28  ;;  %v169_v50 = vmul.bf16 %v144_v40, %v94_v38  ;;  %v620_v56 = vunpack.c.l.s8.bf16 %v595_v41 }
  0x52   :  { %1061 = vmatpush1.bf16.msra.mxu1 %v1196_v30  ;;  %v1041_v53 = vsel %vm512_vm0, %v1220_v43, 0  ;;  %v1219_v54 = vcombine.high %v698_v44, %v699_v45  ;;  %v1218_v55 = vcombine.low %v698_v44, %v699_v45  ;;  %1169 = vmatprep.subr.msk.bf16.mxu0 %vm512_vm0, %v1168_v47  ;;  %v621_v59 = vunpack.c.h.s8.bf16 %v595_v41  ;;  %v642_v30 = vld [vmem:[#allocation5 + $0xa4] sm:$0xff]  }
  0x53   :  { %1222 = vmatprep.subr.msk.bf16.mxu1 %vm512_vm0, %v1221_v42  ;;  %v514_v57 = vsel %vm512_vm0, %v1167_v48, 0  ;;  %v170_v58 = vmul.bf16 %v145_v49, %v95_v39  ;;  %v671_v60 = vunpack.c.l.s8.bf16 %v646_v46  ;;  %v672_v62 = vunpack.c.h.s8.bf16 %v646_v46 }
  0x54   :  { %542 = vmatpush2.bf16.msra.mxu0 %v514_v57  ;;  %v92_v63 = vunpack.c.l.s8.bf16 %v67_v51  ;;  %v93_v0 = vunpack.c.h.s8.bf16 %v67_v51  ;;  %v142_v1 = vunpack.c.l.s8.bf16 %v117_v52  ;;  %v143_v14 = vunpack.c.h.s8.bf16 %v117_v52 }
  0x55   :  { %v1166_v5 = vcombine.high %v169_v50, %v170_v58  ;;  %v1165_v6 = vcombine.low %v169_v50, %v170_v58  ;;  %v696_v13 = vmul.bf16 %v671_v60, %v620_v56  ;;  %v697_v9 = vmul.bf16 %v672_v62, %v621_v59 }
  0x56   :  { %1069 = vmatpush2.bf16.msra.mxu1 %v1041_v53  ;;  %v167_v11 = vmul.bf16 %v142_v1, %v92_v63  ;;  %v618_v3 = vunpack.c.l.s8.bf16 %v593_v61  ;;  %v619_v7 = vunpack.c.h.s8.bf16 %v593_v61  ;;  %v168_v10 = vmul.bf16 %v143_v14, %v93_v0 }
  0x57   :  { %1070 = vmatprep.subr.bf16.mxu1 %v1219_v54  ;;  %543 = vmatprep.subr.bf16.mxu0 %v1166_v5  ;;  %v669_v15 = vunpack.c.l.s8.bf16 %v644_v2  ;;  %v670_v17 = vunpack.c.h.s8.bf16 %v644_v2  ;;  %v90_v18 = vunpack.c.l.s8.bf16 %v65_v4  ;;  %v1217_v20 = vcombine.high %v696_v13, %v697_v9 }
  0x58   :  { %544 = vmatpush2.bf16.msra.mxu0 %v1165_v6  ;;  %v1216_v21 = vcombine.low %v696_v13, %v697_v9  ;;  %v91_v22 = vunpack.c.h.s8.bf16 %v65_v4  ;;  %v140_v23 = vunpack.c.l.s8.bf16 %v115_v16  ;;  %v1164_v25 = vcombine.high %v167_v11, %v168_v10 }
  0x59   :  { %v1163_v26 = vcombine.low %v167_v11, %v168_v10  ;;  %v694_v27 = vmul.bf16 %v669_v15, %v618_v3  ;;  %v695_v28 = vmul.bf16 %v670_v17, %v619_v7  ;;  %v141_v31 = vunpack.c.h.s8.bf16 %v115_v16 }
  0x5a   :  { %1071 = vmatpush2.bf16.msra.mxu1 %v1218_v55  ;;  %v165_v32 = vmul.bf16 %v140_v23, %v90_v18  ;;  %v88_v33 = vunpack.c.l.s8.bf16 %v63_v19  ;;  %v89_v34 = vunpack.c.h.s8.bf16 %v63_v19  ;;  %v1419_v35 = vmul.f32 2.0, %v1398_v8  ;;  %545 = vmatprep.subr.bf16.mxu0 %v1164_v25 }
  0x5b   :  { %1072 = vmatprep.subr.bf16.mxu1 %v1217_v20  ;;  %v1215_v36 = vcombine.high %v694_v27, %v695_v28  ;;  %v138_v37 = vunpack.c.l.s8.bf16 %v113_v24  ;;  %v139_v38 = vunpack.c.h.s8.bf16 %v113_v24  ;;  %v166_v39 = vmul.bf16 %v141_v31, %v91_v22 }
  0x5c   :  { %546 = vmatpush2.bf16.msra.mxu0 %v1163_v26  ;;  %v616_v40 = vunpack.c.l.s8.bf16 %v591_v29  ;;  %v617_v41 = vunpack.c.h.s8.bf16 %v591_v29  ;;  %v667_v42 = vunpack.c.l.s8.bf16 %v642_v30  ;;  %v1214_v43 = vcombine.low %v694_v27, %v695_v28 }
  0x5d   :  { %v163_v44 = vmul.bf16 %v138_v37, %v88_v33  ;;  %v164_v45 = vmul.bf16 %v139_v38, %v89_v34  ;;  %v668_v46 = vunpack.c.h.s8.bf16 %v642_v30  ;;  %v1162_v47 = vcombine.high %v165_v32, %v166_v39 }
  0x5e   :  { %1073 = vmatpush2.bf16.msra.mxu1 %v1216_v21  ;;  %v1161_v48 = vcombine.low %v165_v32, %v166_v39  ;;  %v692_v49 = vmul.bf16 %v667_v42, %v616_v40  ;;  %v1357_v52 = vmov 1   ;;  %v262_v53 = vadd.f32 98.0, %v1419_v35 }
  0x5f   :  { %1074 = vmatprep.subr.bf16.mxu1 %v1215_v36  ;;  %v1160_v8 = vcombine.high %v163_v44, %v164_v45  ;;  %v693_v50 = vmul.bf16 %v668_v46, %v617_v41  ;;  %v1159_v51 = vcombine.low %v163_v44, %v164_v45  ;;  %1285 = vset.pattern.permute.xlu1 %v1357_v52  ;;  %v245_v54 = vadd.f32 97.0, %v1419_v35 }
  0x60   :  { %547 = vmatprep.subr.bf16.mxu0 %v1162_v47  ;;  %1284 = vset.pattern.permute.xlu0 %v1357_v52  ;;  %v774_v55 = vadd.f32 97.0, %v1403_v12  ;;  %v791_v56 = vadd.f32 98.0, %v1403_v12  ;;  %v279_v57 = vadd.f32 99.0, %v1419_v35  ;;  %v1234_v60 = vtrunc.f32 %v262_v53 }
  0x61   :  { %548 = vmatpush2.bf16.msra.mxu0 %v1161_v48  ;;  %v1213_v58 = vcombine.high %v692_v49, %v693_v50  ;;  %v1212_v59 = vcombine.low %v692_v49, %v693_v50  ;;  %v808_v61 = vadd.f32 99.0, %v1403_v12  ;;  %v1232_v62 = vtrunc.f32 %v245_v54 }
  0x62   :  { %1075 = vmatpush2.bf16.msra.mxu1 %v1214_v43  ;;  %549 = vmatprep.subr.bf16.mxu0 %v1160_v8  ;;  %v1256_v63 = vtrunc.f32 %v774_v55  ;;  %v1258_v0 = vtrunc.f32 %v791_v56  ;;  %v1236_v1 = vtrunc.f32 %v279_v57  ;;  %v1235_v2 = vcvt.f32.s32 %v1234_v60 }
  0x63   :  { %1076 = vmatprep.subr.bf16.mxu1 %v1213_v58  ;;  %v1260_v4 = vtrunc.f32 %v808_v61  ;;  %v296_v5 = vadd.f32 100.0, %v1419_v35  ;;  %v825_v6 = vadd.f32 100.0, %v1403_v12  ;;  %v1233_v13 = vcvt.f32.s32 %v1232_v62 }
  0x64   :  { %v1257_v14 = vcvt.f32.s32 %v1256_v63  ;;  %v1259_v16 = vcvt.f32.s32 %v1258_v0  ;;  %v1237_v9 = vcvt.f32.s32 %v1236_v1  ;;  %vm264_vm1 = vcmp.gt.s32.totalorder %v1235_v2, 0 }
  0x65   :  { %550 = vmatpush2.bf16.msra.mxu0 %v1159_v51  ;;  %v1261_v11 = vcvt.f32.s32 %v1260_v4  ;;  %v1238_v3 = vtrunc.f32 %v296_v5  ;;  %v1262_v7 = vtrunc.f32 %v825_v6  ;;  %v265_v10 = vsel %vm264_vm1, %v1235_v2, 0 }
  0x66   :  { %1077 = vmatpush2.bf16.msra.mxu1 %v1212_v59  ;;  %vm247_vm2 = vcmp.gt.s32.totalorder %v1233_v13, 0  ;;  %vm776_vm3 = vcmp.gt.s32.totalorder %v1257_v14, 0  ;;  %vm793_vm4 = vcmp.gt.s32.totalorder %v1259_v16, 0  ;;  %vm266_vm5 = vcmp.lt.s32.totalorder %v265_v10, 199 }
  0x67   :  { %v248_v15 = vsel %vm247_vm2, %v1233_v13, 0  ;;  %v777_v17 = vsel %vm776_vm3, %v1257_v14, 0  ;;  %v794_v18 = vsel %vm793_vm4, %v1259_v16, 0  ;;  %v267_v19 = vsel %vm266_vm5, %v265_v10, 199 }
  0x68   :  { %vm249_vm6 = vcmp.lt.s32.totalorder %v248_v15, 199  ;;  %vm778_vm7 = vcmp.lt.s32.totalorder %v777_v17, 199  ;;  %vm795_vm8 = vcmp.lt.s32.totalorder %v794_v18, 199  ;;  %269 = vperm.xlu1 %1285, %v267_v19   ;;  %vm281_vm9 = vcmp.gt.s32.totalorder %v1237_v9, 0 }
  0x69   :  { %v250_v20 = vsel %vm249_vm6, %v248_v15, 199  ;;  %v779_v21 = vsel %vm778_vm7, %v777_v17, 199  ;;  %v796_v22 = vsel %vm795_vm8, %v794_v18, 199  ;;  %v282_v23 = vsel %vm281_vm9, %v1237_v9, 0 }
  0x6a   :  { %252 = vperm.xlu0 %1284, %v250_v20   ;;  %vm810_vm10 = vcmp.gt.s32.totalorder %v1261_v11, 0  ;;  %v1239_v24 = vcvt.f32.s32 %v1238_v3  ;;  %v1263_v25 = vcvt.f32.s32 %v1262_v7  ;;  %vm283_vm11 = vcmp.lt.s32.totalorder %v282_v23, 199 }
  0x6b   :  { %v811_v26 = vsel %vm810_vm10, %v1261_v11, 0  ;;  %v313_v27 = vadd.f32 101.0, %v1419_v35  ;;  %v842_v28 = vadd.f32 101.0, %v1403_v12  ;;  %v284_v29 = vsel %vm283_vm11, %v282_v23, 199 }
  0x6c   :  { %vm812_vm12 = vcmp.lt.s32.totalorder %v811_v26, 199  ;;  %vm298_vm13 = vcmp.gt.s32.totalorder %v1239_v24, 0  ;;  %vm827_vm14 = vcmp.gt.s32.totalorder %v1263_v25, 0  ;;  %781 = vperm.xlu1 %1285, %v779_v21   ;;  %v330_v34 = vadd.f32 102.0, %v1419_v35 }
  0x6d   :  { %v299_v30 = vsel %vm298_vm13, %v1239_v24, 0  ;;  %v828_v31 = vsel %vm827_vm14, %v1263_v25, 0  ;;  %v1240_v32 = vtrunc.f32 %v313_v27  ;;  %v1264_v33 = vtrunc.f32 %v842_v28 }
  0x6e   :  { %798 = vperm.xlu0 %1284, %v796_v22   ;;  %vm300_vm15 = vcmp.lt.s32.totalorder %v299_v30, 199  ;;  %vm829_vm0 = vcmp.lt.s32.totalorder %v828_v31, 199  ;;  %v813_v36 = vsel %vm812_vm12, %v811_v26, 199  ;;  %v859_v39 = vadd.f32 102.0, %v1403_v12 }
  0x6f   :  { %v301_v37 = vsel %vm300_vm15, %v299_v30, 199  ;;  %v1241_v38 = vcvt.f32.s32 %v1240_v32  ;;  %v1265_v40 = vcvt.f32.s32 %v1264_v33  ;;  %v1242_v41 = vtrunc.f32 %v330_v34 }
  0x70   :  { %v347_v42 = vadd.f32 103.0, %v1419_v35  ;;  %v876_v43 = vadd.f32 103.0, %v1403_v12  ;;  %286 = vperm.xlu1 %1285, %v284_v29   ;;  %v830_v44 = vsel %vm829_vm0, %v828_v31, 199  ;;  %v1266_v45 = vtrunc.f32 %v859_v39 }
  0x71   :  { %vm315_vm1 = vcmp.gt.s32.totalorder %v1241_v38, 0  ;;  %v364_v46 = vadd.f32 104.0, %v1419_v35  ;;  %vm844_vm2 = vcmp.gt.s32.totalorder %v1265_v40, 0  ;;  %v1243_v48 = vcvt.f32.s32 %v1242_v41 }
  0x72   :  { %815 = vperm.xlu0 %1284, %v813_v36   ;;  %v316_v47 = vsel %vm315_vm1, %v1241_v38, 0  ;;  %v1244_v49 = vtrunc.f32 %v347_v42  ;;  %v845_v8 = vsel %vm844_vm2, %v1265_v40, 0  ;;  %v1267_v50 = vcvt.f32.s32 %v1266_v45 }
  0x73   :  { %vm317_vm3 = vcmp.lt.s32.totalorder %v316_v47, 199  ;;  %v1268_v51 = vtrunc.f32 %v876_v43  ;;  %vm846_vm4 = vcmp.lt.s32.totalorder %v845_v8, 199  ;;  %vm332_vm5 = vcmp.gt.s32.totalorder %v1243_v48, 0 }
  0x74   :  { %v1245_v52 = vcvt.f32.s32 %v1244_v49  ;;  %303 = vperm.xlu1 %1285, %v301_v37   ;;  %v333_v53 = vsel %vm332_vm5, %v1243_v48, 0  ;;  %vm861_vm6 = vcmp.gt.s32.totalorder %v1267_v50, 0  ;;  %v893_v55 = vadd.f32 104.0, %v1403_v12 }
  0x75   :  { %v1269_v54 = vcvt.f32.s32 %v1268_v51  ;;  %v318_v35 = vsel %vm317_vm3, %v316_v47, 199  ;;  %v862_v56 = vsel %vm861_vm6, %v1267_v50, 0  ;;  %v1246_v57 = vtrunc.f32 %v364_v46 }
  0x76   :  { %832 = vperm.xlu0 %1284, %v830_v44   ;;  %vm349_vm7 = vcmp.gt.s32.totalorder %v1245_v52, 0  ;;  %v847_v58 = vsel %vm846_vm4, %v845_v8, 199  ;;  %vm334_vm8 = vcmp.lt.s32.totalorder %v333_v53, 199  ;;  %vm863_vm10 = vcmp.lt.s32.totalorder %v862_v56, 199 }
  0x77   :  { %vm878_vm9 = vcmp.gt.s32.totalorder %v1269_v54, 0  ;;  %v350_v59 = vsel %vm349_vm7, %v1245_v52, 0  ;;  %v1247_v60 = vcvt.f32.s32 %v1246_v57  ;;  %v1270_v62 = vtrunc.f32 %v893_v55 }
  0x78   :  { %320 = vperm.xlu1 %1285, %v318_v35   ;;  %v879_v61 = vsel %vm878_vm9, %v1269_v54, 0  ;;  %v335_v63 = vsel %vm334_vm8, %v333_v53, 199  ;;  %v864_v0 = vsel %vm863_vm10, %v862_v56, 199  ;;  %vm351_vm12 = vcmp.lt.s32.totalorder %v350_v59, 199 }
  0x79   :  { %vm366_vm11 = vcmp.gt.s32.totalorder %v1247_v60, 0  ;;  %v1271_v12 = vcvt.f32.s32 %v1270_v62  ;;  %vm880_vm13 = vcmp.lt.s32.totalorder %v879_v61, 199  ;;  %v352_v2 = vsel %vm351_vm12, %v350_v59, 199 }
  0x7a   :  { %849 = vperm.xlu0 %1284, %v847_v58   ;;  %v367_v1 = vsel %vm366_vm11, %v1247_v60, 0  ;;  %v881_v5 = vsel %vm880_vm13, %v879_v61, 199  ;;  %v44_v14 = vlaneseq  ;;  %v1358_v15 = vmov 0.0  }
  0x7b   :  { %vm895_vm14 = vcmp.gt.s32.totalorder %v1271_v12, 0  ;;  %vm368_vm15 = vcmp.lt.s32.totalorder %v367_v1, 199 }
  0x7c   :  { %337 = vperm.xlu1 %1285, %v335_v63   ;;  %v896_v4 = vsel %vm895_vm14, %v1271_v12, 0  ;;  %v369_v6 = vsel %vm368_vm15, %v367_v1, 199  ;;  %v1438_v16 = vand.u32 127, %v44_v14 }
  0x7d   :  { %vm897_vm0 = vcmp.lt.s32.totalorder %v896_v4, 199 }
  0x7e   :  { %866 = vperm.xlu0 %1284, %v864_v0   ;;  %v898_v13 = vsel %vm897_vm0, %v896_v4, 199  ;;  %v1441_v9 = vadd.s32 128, %v1438_v16 }
  0x80   :  { %354 = vperm.xlu1 %1285, %v352_v2  }
  0x82   :  { %883 = vperm.xlu0 %1284, %v881_v5  }
  0x84   :  { %371 = vperm.xlu1 %1285, %v369_v6  }
  0x86   :  { %900 = vperm.xlu0 %1284, %v898_v13  }
  0xa4   :  { %v714_v11 = vpop.permute.xlu1 %713  ;;  %v185_v3 = vpop.permute.xlu0 %184 }
  0xa5   :  { %vm715_vm1 = vcmp.eq.s32.totalorder %v1438_v16, %v714_v11  ;;  %vm716_vm2 = vcmp.eq.s32.totalorder %v1441_v9, %v714_v11  ;;  %vm186_vm3 = vcmp.eq.s32.totalorder %v1438_v16, %v185_v3  ;;  %vm187_vm4 = vcmp.eq.s32.totalorder %v1441_v9, %v185_v3 }
  0xa6   :  { %v1172_v21 = vsel %vm715_vm1, 1.0, %v1358_v15  ;;  %v1173_v22 = vsel %vm716_vm2, 1.0, %v1358_v15  ;;  %v1119_v23 = vsel %vm186_vm3, 1.0, %v1358_v15  ;;  %v1120_v24 = vsel %vm187_vm4, 1.0, %v1358_v15 }
  0xa7   :  { %vm508_vm1 = vcmask 588800  }
  0xa8   :  { %v731_v7 = vpop.permute.xlu1 %730  ;;  %v202_v10 = vpop.permute.xlu0 %201 }
  0xa9   :  { %vm732_vm5 = vcmp.eq.s32.totalorder %v1438_v16, %v731_v7  ;;  %vm733_vm6 = vcmp.eq.s32.totalorder %v1441_v9, %v731_v7  ;;  %vm203_vm7 = vcmp.eq.s32.totalorder %v1438_v16, %v202_v10  ;;  %vm204_vm8 = vcmp.eq.s32.totalorder %v1441_v9, %v202_v10 }
  0xaa   :  { %v1174_v17 = vsel %vm732_vm5, 1.0, %v1358_v15  ;;  %v1175_v18 = vsel %vm733_vm6, 1.0, %v1358_v15  ;;  %v1121_v19 = vsel %vm203_vm7, 1.0, %v1358_v15  ;;  %v1122_v20 = vsel %vm204_vm8, 1.0, %v1358_v15 }
  0xab   :  { %v738_v25 = vadd.f32 %v1174_v17, %v1172_v21  ;;  %v739_v26 = vadd.f32 %v1175_v18, %v1173_v22  ;;  %v209_v27 = vadd.f32 %v1121_v19, %v1119_v23  ;;  %v210_v28 = vadd.f32 %v1122_v20, %v1120_v24 }
  0xac   :  { %v748_v29 = vpop.permute.xlu1 %747  ;;  %v219_v30 = vpop.permute.xlu0 %218 }
  0xad   :  { %vm749_vm9 = vcmp.eq.s32.totalorder %v1438_v16, %v748_v29  ;;  %vm750_vm10 = vcmp.eq.s32.totalorder %v1441_v9, %v748_v29  ;;  %vm220_vm11 = vcmp.eq.s32.totalorder %v1438_v16, %v219_v30  ;;  %vm221_vm12 = vcmp.eq.s32.totalorder %v1441_v9, %v219_v30 }
  0xae   :  { %v1176_v31 = vsel %vm749_vm9, 1.0, %v1358_v15  ;;  %v1177_v32 = vsel %vm750_vm10, 1.0, %v1358_v15  ;;  %v1123_v33 = vsel %vm220_vm11, 1.0, %v1358_v15  ;;  %v1124_v34 = vsel %vm221_vm12, 1.0, %v1358_v15 }
  0xaf   :  { %v755_v36 = vadd.f32 %v1176_v31, %v738_v25  ;;  %v756_v37 = vadd.f32 %v1177_v32, %v739_v26  ;;  %v226_v38 = vadd.f32 %v1123_v33, %v209_v27  ;;  %v227_v39 = vadd.f32 %v1124_v34, %v210_v28 }
  0xb0   :  { %v765_v40 = vpop.permute.xlu1 %764  ;;  %v236_v41 = vpop.permute.xlu0 %235 }
  0xb1   :  { %vm766_vm13 = vcmp.eq.s32.totalorder %v1438_v16, %v765_v40  ;;  %vm767_vm14 = vcmp.eq.s32.totalorder %v1441_v9, %v765_v40  ;;  %vm237_vm15 = vcmp.eq.s32.totalorder %v1438_v16, %v236_v41  ;;  %vm238_vm0 = vcmp.eq.s32.totalorder %v1441_v9, %v236_v41 }
  0xb2   :  { %v1178_v42 = vsel %vm766_vm13, 1.0, %v1358_v15  ;;  %v1179_v43 = vsel %vm767_vm14, 1.0, %v1358_v15  ;;  %v1125_v44 = vsel %vm237_vm15, 1.0, %v1358_v15  ;;  %v1126_v45 = vsel %vm238_vm0, 1.0, %v1358_v15 }
  0xb3   :  { %v772_v46 = vadd.f32 %v1178_v42, %v755_v36  ;;  %v243_v47 = vadd.f32 %v1125_v44, %v226_v38  ;;  %v244_v48 = vadd.f32 %v1126_v45, %v227_v39  ;;  %v773_v49 = vadd.f32 %v1179_v43, %v756_v37 }
  0xb5   :  { %v382_v8 = vpack.c.bf16 %v244_v48, %v244_v48  ;;  %v911_v50 = vpack.c.bf16 %v773_v49, %v773_v49  ;;  %v381_v51 = vpack.c.bf16 %v243_v47, %v243_v47  ;;  %v910_v52 = vpack.c.bf16 %v772_v46, %v772_v46 }
  0xb7   :  { %1170 = vmatprep.mubr.msk.bf16.mxu0 %vm508_vm1, %v382_v8  ;;  %1223 = vmatprep.mubr.msk.bf16.mxu1 %vm508_vm1, %v911_v50 }
  0xb8   :  { %552 = vmatmul.mubr.bf16.vlgmr.msra.gmra.mxu0 %v381_v51  ;;  %1079 = vmatmul.mubr.bf16.vlgmr.msra.gmra.mxu1 %v910_v52 }
  0xe3   :  { %v270_v53 = vpop.permute.xlu1 %269 }
  0xe4   :  { %vm271_vm2 = vcmp.eq.s32.totalorder %v1438_v16, %v270_v53  ;;  %vm272_vm3 = vcmp.eq.s32.totalorder %v1441_v9, %v270_v53 }
  0xe5   :  { %v253_v54 = vpop.permute.xlu0 %252  ;;  %v1129_v60 = vsel %vm271_vm2, 1.0, %v1358_v15  ;;  %v1130_v61 = vsel %vm272_vm3, 1.0, %v1358_v15 }
  0xe6   :  { %vm254_vm4 = vcmp.eq.s32.totalorder %v1438_v16, %v253_v54  ;;  %vm255_vm5 = vcmp.eq.s32.totalorder %v1441_v9, %v253_v54 }
  0xe7   :  { %v782_v55 = vpop.permute.xlu1 %781  ;;  %v1127_v62 = vsel %vm254_vm4, 1.0, %v1358_v15  ;;  %v1128_v63 = vsel %vm255_vm5, 1.0, %v1358_v15 }
  0xe8   :  { %vm783_vm6 = vcmp.eq.s32.totalorder %v1438_v16, %v782_v55  ;;  %vm784_vm7 = vcmp.eq.s32.totalorder %v1441_v9, %v782_v55  ;;  %v277_v6 = vadd.f32 %v1129_v60, %v1127_v62  ;;  %v278_v13 = vadd.f32 %v1130_v61, %v1128_v63 }
  0xe9   :  { %v799_v35 = vpop.permute.xlu0 %798  ;;  %v1180_v0 = vsel %vm783_vm6, 1.0, %v1358_v15  ;;  %v1181_v12 = vsel %vm784_vm7, 1.0, %v1358_v15 }
  0xea   :  { %vm800_vm8 = vcmp.eq.s32.totalorder %v1438_v16, %v799_v35  ;;  %vm801_vm9 = vcmp.eq.s32.totalorder %v1441_v9, %v799_v35 }
  0xeb   :  { %v287_v56 = vpop.permute.xlu1 %286  ;;  %v1182_v1 = vsel %vm800_vm8, 1.0, %v1358_v15  ;;  %v1183_v2 = vsel %vm801_vm9, 1.0, %v1358_v15 }
  0xec   :  { %vm288_vm10 = vcmp.eq.s32.totalorder %v1438_v16, %v287_v56  ;;  %vm289_vm11 = vcmp.eq.s32.totalorder %v1441_v9, %v287_v56  ;;  %v806_v11 = vadd.f32 %v1182_v1, %v1180_v0  ;;  %v807_v3 = vadd.f32 %v1183_v2, %v1181_v12 }
  0xed   :  { %v816_v57 = vpop.permute.xlu0 %815  ;;  %v1131_v7 = vsel %vm288_vm10, 1.0, %v1358_v15  ;;  %v1132_v10 = vsel %vm289_vm11, 1.0, %v1358_v15 }
  0xee   :  { %vm817_vm12 = vcmp.eq.s32.totalorder %v1438_v16, %v816_v57  ;;  %vm818_vm13 = vcmp.eq.s32.totalorder %v1441_v9, %v816_v57  ;;  %v294_v21 = vadd.f32 %v1131_v7, %v277_v6  ;;  %v295_v22 = vadd.f32 %v1132_v10, %v278_v13 }
  0xef   :  { %v304_v58 = vpop.permute.xlu1 %303  ;;  %v1184_v17 = vsel %vm817_vm12, 1.0, %v1358_v15  ;;  %v1185_v18 = vsel %vm818_vm13, 1.0, %v1358_v15 }
  0xf0   :  { %vm305_vm14 = vcmp.eq.s32.totalorder %v1438_v16, %v304_v58  ;;  %vm306_vm15 = vcmp.eq.s32.totalorder %v1441_v9, %v304_v58  ;;  %v823_v23 = vadd.f32 %v1184_v17, %v806_v11  ;;  %v824_v24 = vadd.f32 %v1185_v18, %v807_v3 }
  0xf1   :  { %v833_v59 = vpop.permute.xlu0 %832  ;;  %v1133_v25 = vsel %vm305_vm14, 1.0, %v1358_v15  ;;  %v1134_v26 = vsel %vm306_vm15, 1.0, %v1358_v15 }
  0xf2   :  { %vm834_vm0 = vcmp.eq.s32.totalorder %v1438_v16, %v833_v59  ;;  %vm835_vm1 = vcmp.eq.s32.totalorder %v1441_v9, %v833_v59  ;;  %v311_v29 = vadd.f32 %v1133_v25, %v294_v21  ;;  %v312_v30 = vadd.f32 %v1134_v26, %v295_v22 }
  0xf3   :  { %v321_v4 = vpop.permute.xlu1 %320  ;;  %v1186_v27 = vsel %vm834_vm0, 1.0, %v1358_v15  ;;  %v1187_v28 = vsel %vm835_vm1, 1.0, %v1358_v15 }
  0xf4   :  { %vm322_vm2 = vcmp.eq.s32.totalorder %v1438_v16, %v321_v4  ;;  %vm323_vm3 = vcmp.eq.s32.totalorder %v1441_v9, %v321_v4  ;;  %v840_v31 = vadd.f32 %v1186_v27, %v823_v23  ;;  %v841_v32 = vadd.f32 %v1187_v28, %v824_v24 }
  0xf5   :  { %v850_v5 = vpop.permute.xlu0 %849  ;;  %v1135_v33 = vsel %vm322_vm2, 1.0, %v1358_v15  ;;  %v1136_v34 = vsel %vm323_vm3, 1.0, %v1358_v15  ;;  %vm571_vm2 = vcmask 64512  }
  0xf6   :  { %vm851_vm4 = vcmp.eq.s32.totalorder %v1438_v16, %v850_v5  ;;  %vm852_vm5 = vcmp.eq.s32.totalorder %v1441_v9, %v850_v5  ;;  %v328_v40 = vadd.f32 %v1135_v33, %v311_v29  ;;  %v329_v41 = vadd.f32 %v1136_v34, %v312_v30 }
  0xf7   :  { %v338_v19 = vpop.permute.xlu1 %337  ;;  %v1188_v36 = vsel %vm851_vm4, 1.0, %v1358_v15  ;;  %v1189_v37 = vsel %vm852_vm5, 1.0, %v1358_v15 }
  0xf8   :  { %vm339_vm6 = vcmp.eq.s32.totalorder %v1438_v16, %v338_v19  ;;  %vm340_vm7 = vcmp.eq.s32.totalorder %v1441_v9, %v338_v19  ;;  %v857_v42 = vadd.f32 %v1188_v36, %v840_v31  ;;  %v858_v43 = vadd.f32 %v1189_v37, %v841_v32 }
  0xf9   :  { %v867_v20 = vpop.permute.xlu0 %866  ;;  %v1137_v44 = vsel %vm339_vm6, 1.0, %v1358_v15  ;;  %v1138_v45 = vsel %vm340_vm7, 1.0, %v1358_v15 }
  0xfa   :  { %vm868_vm8 = vcmp.eq.s32.totalorder %v1438_v16, %v867_v20  ;;  %vm869_vm9 = vcmp.eq.s32.totalorder %v1441_v9, %v867_v20  ;;  %v345_v8 = vadd.f32 %v1137_v44, %v328_v40  ;;  %v346_v50 = vadd.f32 %v1138_v45, %v329_v41 }
  0xfb   :  { %v355_v38 = vpop.permute.xlu1 %354  ;;  %v1190_v46 = vsel %vm868_vm8, 1.0, %v1358_v15  ;;  %v1191_v47 = vsel %vm869_vm9, 1.0, %v1358_v15 }
  0xfc   :  { %vm356_vm10 = vcmp.eq.s32.totalorder %v1438_v16, %v355_v38  ;;  %vm357_vm11 = vcmp.eq.s32.totalorder %v1441_v9, %v355_v38  ;;  %v874_v51 = vadd.f32 %v1190_v46, %v857_v42  ;;  %v875_v52 = vadd.f32 %v1191_v47, %v858_v43 }
  0xfd   :  { %v884_v39 = vpop.permute.xlu0 %883  ;;  %v1139_v53 = vsel %vm356_vm10, 1.0, %v1358_v15  ;;  %v1140_v54 = vsel %vm357_vm11, 1.0, %v1358_v15 }
  0xfe   :  { %vm885_vm12 = vcmp.eq.s32.totalorder %v1438_v16, %v884_v39  ;;  %vm886_vm13 = vcmp.eq.s32.totalorder %v1441_v9, %v884_v39  ;;  %v362_v56 = vadd.f32 %v1139_v53, %v345_v8  ;;  %v363_v57 = vadd.f32 %v1140_v54, %v346_v50 }
  0xff   :  { %v372_v48 = vpop.permute.xlu1 %371  ;;  %v1192_v55 = vsel %vm885_vm12, 1.0, %v1358_v15  ;;  %v1193_v35 = vsel %vm886_vm13, 1.0, %v1358_v15 }
 0x100   :  { %vm373_vm14 = vcmp.eq.s32.totalorder %v1438_v16, %v372_v48  ;;  %vm374_vm15 = vcmp.eq.s32.totalorder %v1441_v9, %v372_v48  ;;  %v891_v58 = vadd.f32 %v1192_v55, %v874_v51  ;;  %v892_v59 = vadd.f32 %v1193_v35, %v875_v52 }
 0x101   :  { %v901_v49 = vpop.permute.xlu0 %900  ;;  %v1141_v60 = vsel %vm373_vm14, 1.0, %v1358_v15  ;;  %v1142_v61 = vsel %vm374_vm15, 1.0, %v1358_v15 }
 0x102   :  { %vm902_vm0 = vcmp.eq.s32.totalorder %v1438_v16, %v901_v49  ;;  %vm903_vm1 = vcmp.eq.s32.totalorder %v1441_v9, %v901_v49  ;;  %v379_v1 = vadd.f32 %v1141_v60, %v362_v56  ;;  %v380_v4 = vadd.f32 %v1142_v61, %v363_v57 }
 0x103   :  { %v1194_v62 = vsel %vm902_vm0, 1.0, %v1358_v15  ;;  %v1195_v63 = vsel %vm903_vm1, 1.0, %v1358_v15  ;;  %v567_v15 = vshrl.u32 %v44_v14, 7 }
 0x104   :  { %v908_v2 = vadd.f32 %v1194_v62, %v891_v58  ;;  %v909_v5 = vadd.f32 %v1195_v63, %v892_v59 }
 0x105   :  { %v568_v22 = vsub.s32 %v1438_v16, %v567_v15 }
 0x178   :  { %v553_v0 = vpop.f32.mrf.mxu0  ;;  %v1080_v12 = vpop.f32.mrf.mxu1 }
 0x179   :  { %v560_v13 = vmul.f32 %v553_v0, %v379_v1  ;;  %v1087_v11 = vmul.f32 %v1080_v12, %v908_v2 }
 0x17a   :  { %v555_v6 = vpop.f32.mrf.mxu0  ;;  %v1082_v9 = vpop.f32.mrf.mxu1 }
 0x17b   :  { %v561_v3 = vmul.f32 %v555_v6, %v380_v4  ;;  %v1088_v7 = vmul.f32 %v1082_v9, %v909_v5 }
 0x17c   :  { %v557_v10 = vpop.f32.mrf.mxu0  ;;  %v1084_v17 = vpop.f32.mrf.mxu1 }
 0x17d   :  { %v1089_v18 = vadd.f32 %v1088_v7, %v1087_v11  ;;  %v562_v19 = vadd.f32 %v561_v3, %v560_v13 }
 0x17e   :  { %v558_v20 = vpop.f32.mrf.mxu0  ;;  %v1085_v21 = vpop.f32.mrf.mxu1 }
 0x17f   :  { %1090 = vadd.xlane.f32.xlu0 %v1089_v18  ;;  %563 = vadd.xlane.f32.xlu1 %v562_v19 }
 0x208   :  { %v1091_v23 = vpop.xlane.xlu0 %1090  ;;  %v564_v24 = vpop.xlane.xlu1 %563 }
 0x209   :  { %v1096_v25 = vrot.slane %v1091_v23, %v568_v22  ;;  %v569_v26 = vrot.slane %v564_v24, %v568_v22 }
 0x20b   :  { %v1098_v27 = vsel %vm571_vm2, %v1096_v25, 0.0  ;;  %v572_v28 = vsel %vm571_vm2, %v569_v26, 0.0 }
 0x20c   :  { %1100 = vst [vmem:[#allocation7 + $0x1] sm:$0x1] %v1098_v27  ;;  %573 = vst [vmem:[#allocation7] sm:$0x1] %v572_v28 }
 0x20d   :  { %1337 = shalt.err (!%p1334_p0)
}
 0x20e   :  { %s1360_s28 = smov 16   ;;  %s1361_s29 = smov 1  }
 0x20f   :  { %1112 = dma.vmem_to_hbm [thread:$0]  %s1107_s2, 32, %s1547_s3, [#allocation4], %s1360_s28, %s1360_s28, %s1361_s29  }
 0x210   :  { %1350 = dma.done.wait [#allocation4], 32  }
 0x211   :  { %1351 = vsyncadd [#allocation4], 4294967264 }
 0x212   :  { %1116 = vsyncpa [#allocation3], 1 }
 0x213   :  { %1117 = vsyncpa [#allocation6], 1 }
 0x214   :  { %1118 = vsyncpa [#allocation4], 1 }

</bundles_post_ra>
